<compile_context>
chip_gen: v7x
topology: tpu7x:2x2x1
jax: 0.10.0
libtpu: 0.0.40
codegen_flags: <defaults>
</compile_context>

<pallas_src>
import jax
import jax.numpy as jnp
from jax.experimental import pallas as pl
from jax.experimental.pallas import tpu as pltpu

# ---- "configs" ----
ENCODER_DIM = 64
SHARED_DIM = 64
ATTENTION_HEADS = 4   # mathematically irrelevant for seq-len-1 attention (see note above)
HIDDEN_DIM = 32
NUM_CLASSES = 4
LN_EPS = 1e-5
OUT_WIDTH = 4 * SHARED_DIM   # packed output slab: [refined | uah_emb | physio_emb | logits_pad]

# ---- packed bias/LN/gate vector slab layout (rows of a (VEC_ROWS, 128) f32 array) ----
ROW_MOD_B = 0      # fused modality-projection bias (128)
ROW_U2S_LN = 1     # [:64] gamma, [64:] beta
ROW_P2S_LN = 2     # [:64] gamma, [64:] beta
ROW_CA_B = 3       # fused cross-attention bias (128)
ROW_FG = 4         # [:64] fg_b1, [64:] fg_w2 (gate row vector)
ROW_FG_B2 = 5      # lane 0: fg_b2 scalar
ROW_TR_BASE = 6    # 4 rows per transformer layer (see fuse_params)
ROW_CL_B1 = 14     # classifier bias 1 (padded to 128)
ROW_CL_B2 = 15     # classifier bias 2 (padded to 128)
ROW_CL_B3 = 16     # classifier bias 3 (padded, [:64])
VEC_ROWS = 24      # padded to a multiple of 8 sublanes


def _layernorm(x, g, b):
    mu = jnp.mean(x, axis=-1, keepdims=True)
    var = jnp.mean((x - mu) ** 2, axis=-1, keepdims=True)
    return (x - mu) * jax.lax.rsqrt(var + LN_EPS) * g + b


def _round_up(n, m):
    return ((n + m - 1) // m) * m


def _cdiv(a, b):
    return -(-a // b)


def _choose_batch_tile(B, *, max_tile=1024, min_steps=2):
    """Adaptive batch tile: multiple of 8, <= max_tile, >= min_steps grid steps when possible,
    padding waste limited to a few sublane rows (not a full tile)."""
    Bp8 = _round_up(max(B, 1), 8)
    steps = max(1, _cdiv(Bp8, max_tile))
    if Bp8 >= min_steps * 8:
        steps = max(steps, min_steps)          # keep both v7x TensorCores fed
    bt = _round_up(_cdiv(Bp8, steps), 8)
    steps = _cdiv(Bp8, bt)
    return bt, bt * steps


def fusion_kernel(
    # per-row activations / mask
    x_ref, mask_ref,
    # packed bias / LayerNorm / gate vector slab (f32)
    vec_ref,
    # bf16 matmul weights
    mod_w_ref, ca_w_ref, fg_w1_ref,
    tr_attn_w_ref, tr_ff1_w_ref, tr_ff2_w_ref,
    cl_w1_ref, cl_w2_ref, cl_w3_ref,
    # packed bf16 output slab
    out_ref,
):
    f32 = jnp.float32
    bf16 = jnp.bfloat16
    D = SHARED_DIM

    has_u = mask_ref[:, 0:1].astype(f32)          # (bt, 1) in {0, 1}
    has_p = mask_ref[:, 1:2].astype(f32)

    # ---- fused modality -> shared space: one (bt,128)@(128,128) block-diagonal matmul ----
    xin = x_ref[...].astype(bf16)                                            # [uah | physio]
    pre = jnp.dot(xin, mod_w_ref[...], preferred_element_type=f32) + vec_ref[ROW_MOD_B:ROW_MOD_B + 1, :]

    # per-modality LayerNorm + ReLU (Dropout == identity in eval), f32 on the VPU
    su = jnp.maximum(_layernorm(pre[:, :D], vec_ref[ROW_U2S_LN:ROW_U2S_LN + 1, :D],
                                vec_ref[ROW_U2S_LN:ROW_U2S_LN + 1, D:]), 0.0)
    sp = jnp.maximum(_layernorm(pre[:, D:], vec_ref[ROW_P2S_LN:ROW_P2S_LN + 1, :D],
                                vec_ref[ROW_P2S_LN:ROW_P2S_LN + 1, D:]), 0.0)

    # scatter-into-zeros == dense compute * mask
    full_u = su * has_u
    full_p = sp * has_p

    # ---- cross-modal MHA, both directions in ONE matmul via swap-block weight ----
    # packed @ [[0,Wca],[Wca,0]] = [full_p@Wca | full_u@Wca] = [uah_attended | physio_attended]
    packed = jnp.concatenate([full_u, full_p], axis=-1).astype(bf16)         # (bt, 128)
    attended = (jnp.dot(packed, ca_w_ref[...], preferred_element_type=f32)
                + vec_ref[ROW_CA_B:ROW_CA_B + 1, :])

    # ---- fusion gate (attended is already the concat the gate expects) ----
    g = jnp.tanh(jnp.dot(attended.astype(bf16), fg_w1_ref[...], preferred_element_type=f32)
                 + vec_ref[ROW_FG:ROW_FG + 1, :D])
    # Linear(D -> 1) as a masked lane reduction on the VPU/XLU (avoids a 1-lane matmul)
    w = jax.nn.sigmoid(jnp.sum(g * vec_ref[ROW_FG:ROW_FG + 1, D:], axis=-1, keepdims=True)
                       + vec_ref[ROW_FG_B2:ROW_FG_B2 + 1, 0:1])

    uah_att = attended[:, :D]
    physio_att = attended[:, D:]
    fused_both = w * uah_att + (1.0 - w) * physio_att

    both = has_u * has_p
    u_only = has_u * (1.0 - has_p)
    p_only = (1.0 - has_u) * has_p
    x = both * fused_both + u_only * full_u + p_only * full_p                # fused_shared

    # ---- shared transformer: 2 post-norm encoder layers on a length-1 sequence ----
    for l in range(2):
        r = ROW_TR_BASE + 4 * l
        attn = (jnp.dot(x.astype(bf16), tr_attn_w_ref[l], preferred_element_type=f32)
                + vec_ref[r:r + 1, :D])
        x = _layernorm(x + attn, vec_ref[r:r + 1, D:], vec_ref[r + 1:r + 2, :D])
        h = jnp.maximum(jnp.dot(x.astype(bf16), tr_ff1_w_ref[l], preferred_element_type=f32)
                        + vec_ref[r + 2:r + 3, :], 0.0)
        ff = (jnp.dot(h.astype(bf16), tr_ff2_w_ref[l], preferred_element_type=f32)
              + vec_ref[r + 3:r + 4, :D])
        x = _layernorm(x + ff, vec_ref[r + 1:r + 2, D:], vec_ref[r + 3:r + 4, D:])

    # ---- classifier on a 128-lane padded datapath (zeros exact through ReLU) ----
    h1 = jnp.maximum(jnp.dot(x.astype(bf16), cl_w1_ref[...], preferred_element_type=f32)
                     + vec_ref[ROW_CL_B1:ROW_CL_B1 + 1, :], 0.0)
    h2 = jnp.maximum(jnp.dot(h1.astype(bf16), cl_w2_ref[...], preferred_element_type=f32)
                     + vec_ref[ROW_CL_B2:ROW_CL_B2 + 1, :], 0.0)
    logits_pad = (jnp.dot(h2.astype(bf16), cl_w3_ref[...], preferred_element_type=f32)
                  + vec_ref[ROW_CL_B3:ROW_CL_B3 + 1, :D])

    # ---- single lane-dense 256-wide bf16 store ----
    out_ref[...] = jnp.concatenate([x, full_u, full_p, logits_pad], axis=-1).astype(out_ref.dtype)


# ---------------- one-time algebraic weight pre-fusion (call once at model load) ----------------
def fuse_params(p):
    f32, bf16 = jnp.float32, jnp.bfloat16
    D, E, H, H2, C = SHARED_DIM, ENCODER_DIM, HIDDEN_DIM, HIDDEN_DIM // 2, NUM_CLASSES
    Z = jnp.zeros((D, D), f32)

    # cross-modal MHA (seq-len 1): out_proj(v_proj(value)) ; both directions share weights,
    # so a swap-block weight computes [uah_attended | physio_attended] in one matmul.
    W_ca = p["ca_wv"] @ p["ca_wo"]
    b_ca = p["ca_bv"] @ p["ca_wo"] + p["ca_bo"]
    ca_w = jnp.block([[Z, W_ca], [W_ca, Z]])                                  # (128, 128)
    ca_b = jnp.concatenate([b_ca, b_ca], axis=-1)                             # (1, 128)

    # modality -> shared projections as one block-diagonal matmul
    mod_w = jnp.block([[p["u2s_w"], jnp.zeros((E, D), f32)],
                       [jnp.zeros((E, D), f32), p["p2s_w"]]])                 # (128, 128)
    mod_b = jnp.concatenate([p["u2s_b"], p["p2s_b"]], axis=-1)                # (1, 128)

    # transformer self-attention (seq-len 1): Wv@Wo fusion per layer
    tr_attn_w = jnp.einsum("lij,ljk->lik", p["tr_wv"], p["tr_wo"])            # (2, 64, 64)
    tr_attn_b = jnp.einsum("lij,ljk->lik", p["tr_bv"], p["tr_wo"]) + p["tr_bo"]

    # classifier padded to a 128-lane datapath (zeros are exact through ReLU)
    cl_w1 = jnp.zeros((D, 2 * D), f32).at[:, :H].set(p["cl_w1"])
    cl_b1 = jnp.zeros((1, 2 * D), f32).at[:, :H].set(p["cl_b1"])
    cl_w2 = jnp.zeros((2 * D, 2 * D), f32).at[:H, :H2].set(p["cl_w2"])
    cl_b2 = jnp.zeros((1, 2 * D), f32).at[:, :H2].set(p["cl_b2"])
    cl_w3 = jnp.zeros((2 * D, D), f32).at[:H2, :C].set(p["cl_w3"])
    cl_b3 = jnp.zeros((1, D), f32).at[:, :C].set(p["cl_b3"])

    # pack every small bias / LayerNorm / gate vector into one (VEC_ROWS, 128) f32 slab
    vec = jnp.zeros((VEC_ROWS, 2 * D), f32)
    vec = vec.at[ROW_MOD_B].set(mod_b[0])
    vec = vec.at[ROW_U2S_LN, :D].set(p["u2s_g"][0]).at[ROW_U2S_LN, D:].set(p["u2s_beta"][0])
    vec = vec.at[ROW_P2S_LN, :D].set(p["p2s_g"][0]).at[ROW_P2S_LN, D:].set(p["p2s_beta"][0])
    vec = vec.at[ROW_CA_B].set(ca_b[0])
    vec = vec.at[ROW_FG, :D].set(p["fg_b1"][0]).at[ROW_FG, D:].set(p["fg_w2"][0])
    vec = vec.at[ROW_FG_B2, 0].set(p["fg_b2"][0, 0])
    for l in range(2):
        r = ROW_TR_BASE + 4 * l
        vec = vec.at[r, :D].set(tr_attn_b[l, 0]).at[r, D:].set(p["tr_ln1_g"][l, 0])
        vec = vec.at[r + 1, :D].set(p["tr_ln1_b"][l, 0]).at[r + 1, D:].set(p["tr_ln2_g"][l, 0])
        vec = vec.at[r + 2].set(p["tr_ff1_b"][l, 0])
        vec = vec.at[r + 3, :D].set(p["tr_ff2_b"][l, 0]).at[r + 3, D:].set(p["tr_ln2_b"][l, 0])
    vec = vec.at[ROW_CL_B1].set(cl_b1[0])
    vec = vec.at[ROW_CL_B2].set(cl_b2[0])
    vec = vec.at[ROW_CL_B3, :D].set(cl_b3[0])

    cast = lambda a: a.astype(bf16)   # MXU-native operands; accumulation stays f32 in-kernel
    return {
        "vec": vec,
        "mod_w": cast(mod_w), "ca_w": cast(ca_w), "fg_w1": cast(p["fg_w1"]),
        "tr_attn_w": cast(tr_attn_w), "tr_ff1_w": cast(p["tr_ff1_w"]),
        "tr_ff2_w": cast(p["tr_ff2_w"]),
        "cl_w1": cast(cl_w1), "cl_w2": cast(cl_w2), "cl_w3": cast(cl_w3),
    }


def shared_latent_space_fusion(modality_raw, modality_mask, fused, *, max_tile=1024):
    """Pallas-backed forward.

    modality_raw: (B, 2*ENCODER_DIM) lane-dense slab [uah_raw | physio_raw] emitted by the
    (frozen) encoders.  Returns (logits, refined_shared, uah_emb, physio_emb) in f32.
    """
    B = modality_raw.shape[0]
    D = SHARED_DIM

    bt, Bp = _choose_batch_tile(B, max_tile=max_tile)

    def padb(x):
        return jnp.pad(x, ((0, Bp - B), (0, 0))) if Bp != B else x

    x = padb(modality_raw)
    mask = padb(modality_mask.astype(jnp.float32))

    weights = [fused["vec"], fused["mod_w"], fused["ca_w"], fused["fg_w1"],
               fused["tr_attn_w"], fused["tr_ff1_w"], fused["tr_ff2_w"],
               fused["cl_w1"], fused["cl_w2"], fused["cl_w3"]]

    def act_spec(feat):
        return pl.BlockSpec((bt, feat), lambda i: (i, 0))

    def full_spec(a):
        nd = a.ndim
        return pl.BlockSpec(a.shape, lambda i, _nd=nd: (0,) * _nd)  # resident weights

    in_specs = [act_spec(2 * ENCODER_DIM), act_spec(2)] + [full_spec(w) for w in weights]
    out_spec = pl.BlockSpec((bt, OUT_WIDTH), lambda i: (i, 0))

    out = pl.pallas_call(
        fusion_kernel,
        out_shape=jax.ShapeDtypeStruct((Bp, OUT_WIDTH), jnp.bfloat16),  # halved writeback
        grid=(Bp // bt,),
        in_specs=in_specs,
        out_specs=out_spec,
        compiler_params=pltpu.CompilerParams(
            dimension_semantics=("parallel",),
            vmem_limit_bytes=32 * 1024 * 1024),
    )(x, mask, *weights)

    out = out[:B].astype(jnp.float32)
    refined = out[:, 0:D]
    uah_emb = out[:, D:2 * D]
    physio_emb = out[:, 2 * D:3 * D]
    logits = out[:, 3 * D:3 * D + NUM_CLASSES]
    return logits, refined, uah_emb, physio_emb


# ---------------- deterministic parameter construction ----------------
def _linear(key, fan_in, fan_out):
    bound = 1.0 / (fan_in ** 0.5)
    kw, kb = jax.random.split(key)
    W = jax.random.uniform(kw, (fan_in, fan_out), jnp.float32, -bound, bound)
    b = jax.random.uniform(kb, (1, fan_out), jnp.float32, -bound, bound)
    return W, b


def init_params(key):
    D, E, H = SHARED_DIM, ENCODER_DIM, HIDDEN_DIM
    H2, C = HIDDEN_DIM // 2, NUM_CLASSES
    ks = jax.random.split(key, 24)
    p = {}
    p["u2s_w"], p["u2s_b"] = _linear(ks[0], E, D)
    p["u2s_g"], p["u2s_beta"] = jnp.ones((1, D)), jnp.zeros((1, D))
    p["p2s_w"], p["p2s_b"] = _linear(ks[1], E, D)
    p["p2s_g"], p["p2s_beta"] = jnp.ones((1, D)), jnp.zeros((1, D))
    p["ca_wv"], p["ca_bv"] = _linear(ks[2], D, D)
    p["ca_wo"], p["ca_bo"] = _linear(ks[3], D, D)
    p["fg_w1"], p["fg_b1"] = _linear(ks[4], 2 * D, D)
    w2, b2 = _linear(ks[5], D, 1)
    p["fg_w2"], p["fg_b2"] = w2.reshape(1, D), b2          # (1,D) row; kernel reduces over lanes
    tr = {k: [] for k in ["tr_wv", "tr_bv", "tr_wo", "tr_bo", "tr_ln1_g", "tr_ln1_b",
                          "tr_ff1_w", "tr_ff1_b", "tr_ff2_w", "tr_ff2_b", "tr_ln2_g", "tr_ln2_b"]}
    for l in range(2):
        base = 6 + 4 * l
        wv, bv = _linear(ks[base + 0], D, D)
        wo, bo = _linear(ks[base + 1], D, D)
        w1, b1 = _linear(ks[base + 2], D, 2 * D)
        w2_, b2_ = _linear(ks[base + 3], 2 * D, D)
        tr["tr_wv"].append(wv); tr["tr_bv"].append(bv)
        tr["tr_wo"].append(wo); tr["tr_bo"].append(bo)
        tr["tr_ln1_g"].append(jnp.ones((1, D))); tr["tr_ln1_b"].append(jnp.zeros((1, D)))
        tr["tr_ff1_w"].append(w1); tr["tr_ff1_b"].append(b1)
        tr["tr_ff2_w"].append(w2_); tr["tr_ff2_b"].append(b2_)
        tr["tr_ln2_g"].append(jnp.ones((1, D))); tr["tr_ln2_b"].append(jnp.zeros((1, D)))
    for k, v in tr.items():
        p[k] = jnp.stack(v, axis=0)
    p["cl_w1"], p["cl_b1"] = _linear(ks[20], D, H)
    p["cl_w2"], p["cl_b2"] = _linear(ks[21], H, H2)
    p["cl_w3"], p["cl_b3"] = _linear(ks[22], H2, C)
    return p


# ---------------- pure-JAX reference (un-fused f32 weights; numerical sanity check) ----------------
def reference_forward(uah_raw, physio_raw, mask_f, p):
    def ln(x, g, b):
        mu = jnp.mean(x, -1, keepdims=True)
        var = jnp.mean((x - mu) ** 2, -1, keepdims=True)
        return (x - mu) / jnp.sqrt(var + LN_EPS) * g + b

    has_u, has_p = mask_f[:, 0:1], mask_f[:, 1:2]
    uah_shared = jax.nn.relu(ln(uah_raw @ p["u2s_w"] + p["u2s_b"], p["u2s_g"], p["u2s_beta"]))
    physio_shared = jax.nn.relu(ln(physio_raw @ p["p2s_w"] + p["p2s_b"], p["p2s_g"], p["p2s_beta"]))
    full_u, full_p = uah_shared * has_u, physio_shared * has_p
    mha = lambda v: (v @ p["ca_wv"] + p["ca_bv"]) @ p["ca_wo"] + p["ca_bo"]
    uah_att, physio_att = mha(full_p), mha(full_u)
    concat = jnp.concatenate([uah_att, physio_att], -1)
    g = jnp.tanh(concat @ p["fg_w1"] + p["fg_b1"])
    w = jax.nn.sigmoid(jnp.sum(g * p["fg_w2"], -1, keepdims=True) + p["fg_b2"])
    fused_both = w * uah_att + (1 - w) * physio_att
    both, u_only, p_only = has_u * has_p, has_u * (1 - has_p), (1 - has_u) * has_p
    x = both * fused_both + u_only * full_u + p_only * full_p
    for l in range(2):
        attn = (x @ p["tr_wv"][l] + p["tr_bv"][l]) @ p["tr_wo"][l] + p["tr_bo"][l]
        x = ln(x + attn, p["tr_ln1_g"][l], p["tr_ln1_b"][l])
        ff = jax.nn.relu(x @ p["tr_ff1_w"][l] + p["tr_ff1_b"][l]) @ p["tr_ff2_w"][l] + p["tr_ff2_b"][l]
        x = ln(x + ff, p["tr_ln2_g"][l], p["tr_ln2_b"][l])
    h = jax.nn.relu(x @ p["cl_w1"] + p["cl_b1"])
    h = jax.nn.relu(h @ p["cl_w2"] + p["cl_b2"])
    return h @ p["cl_w3"] + p["cl_b3"], x, full_u, full_p


# TODO(synk): stand-in for the frozen pretrained encoders (UAHTransformer / PhysionetTransformer).
def encoder_stub(seq, W):
    B = seq.shape[0]
    return jnp.tanh(seq.reshape(B, -1) @ W)


if __name__ == "__main__":
    key = jax.random.PRNGKey(0)
    k1, k2, k3, k4 = jax.random.split(key, 4)

    B, T, F = 8, 8, 16
    uah_seq = jax.random.normal(k1, (B, T, F), jnp.float32)
    physio_seq = jax.random.normal(k2, (B, T, F), jnp.float32)
    # rows covering: both modalities, uah-only, physio-only, neither
    modality_mask = jnp.array(
        [[1, 1], [1, 0], [0, 1], [1, 1], [0, 0], [1, 0], [0, 1], [1, 1]], dtype=bool)

    enc_u_W = 0.1 * jax.random.normal(k3, (T * F, ENCODER_DIM), jnp.float32)
    enc_p_W = 0.1 * jax.random.normal(k4, (T * F, ENCODER_DIM), jnp.float32)
    uah_raw = encoder_stub(uah_seq, enc_u_W)
    physio_raw = encoder_stub(physio_seq, enc_p_W)
    # producers emit into one lane-dense (B, 128) slab consumed directly by the kernel
    modality_raw = jnp.concatenate([uah_raw, physio_raw], axis=-1)

    params = init_params(jax.random.PRNGKey(42))
    fused = fuse_params(params)          # one-time weight pre-fusion at model load

    outs = shared_latent_space_fusion(modality_raw, modality_mask, fused)
    outs = jax.block_until_ready(outs)

    refs = reference_forward(uah_raw, physio_raw, modality_mask.astype(jnp.float32), params)
    # bf16 MXU operands + bf16 output slab -> looser tolerance vs. the f32 reference
    for got, want in zip(outs, refs):
        assert got.shape == want.shape
        assert jnp.allclose(got, want, atol=5e-2, rtol=5e-2), "mismatch vs. reference"

    print("KERNEL_OK")
</pallas_src>

<mosaic_0001>
module attributes {stable_mosaic.version = 11 : i64} {
  func.func @fusion_kernel(%arg0: i32, %arg1: memref<8x128xf32, #tpu.memory_space<vmem>>, %arg2: memref<8x2xf32, #tpu.memory_space<vmem>>, %arg3: memref<24x128xf32, #tpu.memory_space<vmem>>, %arg4: memref<128x128xbf16, #tpu.memory_space<vmem>>, %arg5: memref<128x128xbf16, #tpu.memory_space<vmem>>, %arg6: memref<128x64xbf16, #tpu.memory_space<vmem>>, %arg7: memref<2x64x64xbf16, #tpu.memory_space<vmem>>, %arg8: memref<2x64x128xbf16, #tpu.memory_space<vmem>>, %arg9: memref<2x128x64xbf16, #tpu.memory_space<vmem>>, %arg10: memref<64x128xbf16, #tpu.memory_space<vmem>>, %arg11: memref<128x128xbf16, #tpu.memory_space<vmem>>, %arg12: memref<128x64xbf16, #tpu.memory_space<vmem>>, %arg13: memref<8x256xbf16, #tpu.memory_space<vmem>>) attributes {dimension_semantics = [#tpu.dimension_semantics<parallel>], iteration_bounds = array<i64: 1>, scalar_prefetch = 0 : i64, scratch_operands = 0 : i64, tpu.core_type = #tpu.core_type<tc>, window_params = [{transform_indices = @transform_0, window_bounds = array<i64: 8, 128>}, {transform_indices = @transform_1, window_bounds = array<i64: 8, 2>}, {pipeline_mode = #tpu.pipeline_mode<synchronous>, transform_indices = @transform_2, window_bounds = array<i64: 24, 128>}, {pipeline_mode = #tpu.pipeline_mode<synchronous>, transform_indices = @transform_3, window_bounds = array<i64: 128, 128>}, {pipeline_mode = #tpu.pipeline_mode<synchronous>, transform_indices = @transform_4, window_bounds = array<i64: 128, 128>}, {pipeline_mode = #tpu.pipeline_mode<synchronous>, transform_indices = @transform_5, window_bounds = array<i64: 128, 64>}, {pipeline_mode = #tpu.pipeline_mode<synchronous>, transform_indices = @transform_6, window_bounds = array<i64: 2, 64, 64>}, {pipeline_mode = #tpu.pipeline_mode<synchronous>, transform_indices = @transform_7, window_bounds = array<i64: 2, 64, 128>}, {pipeline_mode = #tpu.pipeline_mode<synchronous>, transform_indices = @transform_8, window_bounds = array<i64: 2, 128, 64>}, {pipeline_mode = #tpu.pipeline_mode<synchronous>, transform_indices = @transform_9, window_bounds = array<i64: 64, 128>}, {pipeline_mode = #tpu.pipeline_mode<synchronous>, transform_indices = @transform_10, window_bounds = array<i64: 128, 128>}, {pipeline_mode = #tpu.pipeline_mode<synchronous>, transform_indices = @transform_11, window_bounds = array<i64: 128, 64>}, {transform_indices = @transform_12, window_bounds = array<i64: 8, 256>}]} {
    %c0 = arith.constant 0 : index
    %c0_0 = arith.constant 0 : index
    %0 = vector.load %arg2[%c0, %c0_0] : memref<8x2xf32, #tpu.memory_space<vmem>>, vector<8x1xf32>
    %c0_1 = arith.constant 0 : index
    %c1 = arith.constant 1 : index
    %1 = vector.load %arg2[%c0_1, %c1] : memref<8x2xf32, #tpu.memory_space<vmem>>, vector<8x1xf32>
    %c0_2 = arith.constant 0 : index
    %c0_3 = arith.constant 0 : index
    %2 = vector.load %arg1[%c0_2, %c0_3] : memref<8x128xf32, #tpu.memory_space<vmem>>, vector<8x128xf32>
    %3 = arith.truncf %2 : vector<8x128xf32> to vector<8x128xbf16>
    %c0_4 = arith.constant 0 : index
    %c0_5 = arith.constant 0 : index
    %4 = vector.load %arg4[%c0_4, %c0_5] : memref<128x128xbf16, #tpu.memory_space<vmem>>, vector<128x128xbf16>
    %cst = arith.constant dense<0.000000e+00> : vector<8x128xf32>
    %5 = tpu.matmul %3, %4, %cst {dimension_numbers = #tpu.dot_dimension_numbers<[1], [0], [0], [1], [0, 0, 1, 1], [], []>} : vector<8x128xbf16>, vector<128x128xbf16>, vector<8x128xf32> -> vector<8x128xf32>
    %c0_6 = arith.constant 0 : index
    %c0_7 = arith.constant 0 : index
    %6 = vector.load %arg3[%c0_6, %c0_7] : memref<24x128xf32, #tpu.memory_space<vmem>>, vector<1x128xf32>
    %7 = vector.broadcast %6 : vector<1x128xf32> to vector<8x128xf32>
    %8 = arith.addf %5, %7 : vector<8x128xf32>
    %9 = vector.extract_strided_slice %8 {offsets = [0, 0], sizes = [8, 64], strides = [1, 1]} : vector<8x128xf32> to vector<8x64xf32>
    %c1_8 = arith.constant 1 : index
    %c0_9 = arith.constant 0 : index
    %10 = vector.load %arg3[%c1_8, %c0_9] : memref<24x128xf32, #tpu.memory_space<vmem>>, vector<1x64xf32>
    %c1_10 = arith.constant 1 : index
    %c64 = arith.constant 64 : index
    %11 = vector.load %arg3[%c1_10, %c64] : memref<24x128xf32, #tpu.memory_space<vmem>>, vector<1x64xf32>
    %cst_11 = arith.constant dense<0.000000e+00> : vector<8xf32>
    %12 = vector.multi_reduction <add>, %9, %cst_11 [1] : vector<8x64xf32> to vector<8xf32>
    %13 = vector.shape_cast %12 : vector<8xf32> to vector<8x1xf32>
    %cst_12 = arith.constant 6.400000e+01 : f32
    %14 = vector.broadcast %cst_12 : f32 to vector<8x1xf32>
    %15 = arith.divf %13, %14 : vector<8x1xf32>
    %16 = vector.broadcast %15 : vector<8x1xf32> to vector<8x64xf32>
    %17 = arith.subf %9, %16 : vector<8x64xf32>
    %18 = arith.mulf %17, %17 : vector<8x64xf32>
    %cst_13 = arith.constant dense<0.000000e+00> : vector<8xf32>
    %19 = vector.multi_reduction <add>, %18, %cst_13 [1] : vector<8x64xf32> to vector<8xf32>
    %20 = vector.shape_cast %19 : vector<8xf32> to vector<8x1xf32>
    %cst_14 = arith.constant 6.400000e+01 : f32
    %21 = vector.broadcast %cst_14 : f32 to vector<8x1xf32>
    %22 = arith.divf %20, %21 : vector<8x1xf32>
    %23 = vector.broadcast %15 : vector<8x1xf32> to vector<8x64xf32>
    %24 = arith.subf %9, %23 : vector<8x64xf32>
    %cst_15 = arith.constant 9.99999974E-6 : f32
    %25 = vector.broadcast %cst_15 : f32 to vector<8x1xf32>
    %26 = arith.addf %22, %25 : vector<8x1xf32>
    %27 = math.rsqrt %26 : vector<8x1xf32>
    %28 = vector.broadcast %27 : vector<8x1xf32> to vector<8x64xf32>
    %29 = arith.mulf %24, %28 : vector<8x64xf32>
    %30 = vector.broadcast %10 : vector<1x64xf32> to vector<8x64xf32>
    %31 = arith.mulf %29, %30 : vector<8x64xf32>
    %32 = vector.broadcast %11 : vector<1x64xf32> to vector<8x64xf32>
    %33 = arith.addf %31, %32 : vector<8x64xf32>
    %cst_16 = arith.constant 0.000000e+00 : f32
    %34 = vector.broadcast %cst_16 : f32 to vector<8x64xf32>
    %35 = arith.maximumf %33, %34 : vector<8x64xf32>
    %36 = vector.extract_strided_slice %8 {offsets = [0, 64], sizes = [8, 64], strides = [1, 1]} : vector<8x128xf32> to vector<8x64xf32>
    %c2 = arith.constant 2 : index
    %c0_17 = arith.constant 0 : index
    %37 = vector.load %arg3[%c2, %c0_17] : memref<24x128xf32, #tpu.memory_space<vmem>>, vector<1x64xf32>
    %c2_18 = arith.constant 2 : index
    %c64_19 = arith.constant 64 : index
    %38 = vector.load %arg3[%c2_18, %c64_19] : memref<24x128xf32, #tpu.memory_space<vmem>>, vector<1x64xf32>
    %cst_20 = arith.constant dense<0.000000e+00> : vector<8xf32>
    %39 = vector.multi_reduction <add>, %36, %cst_20 [1] : vector<8x64xf32> to vector<8xf32>
    %40 = vector.shape_cast %39 : vector<8xf32> to vector<8x1xf32>
    %cst_21 = arith.constant 6.400000e+01 : f32
    %41 = vector.broadcast %cst_21 : f32 to vector<8x1xf32>
    %42 = arith.divf %40, %41 : vector<8x1xf32>
    %43 = vector.broadcast %42 : vector<8x1xf32> to vector<8x64xf32>
    %44 = arith.subf %36, %43 : vector<8x64xf32>
    %45 = arith.mulf %44, %44 : vector<8x64xf32>
    %cst_22 = arith.constant dense<0.000000e+00> : vector<8xf32>
    %46 = vector.multi_reduction <add>, %45, %cst_22 [1] : vector<8x64xf32> to vector<8xf32>
    %47 = vector.shape_cast %46 : vector<8xf32> to vector<8x1xf32>
    %cst_23 = arith.constant 6.400000e+01 : f32
    %48 = vector.broadcast %cst_23 : f32 to vector<8x1xf32>
    %49 = arith.divf %47, %48 : vector<8x1xf32>
    %50 = vector.broadcast %42 : vector<8x1xf32> to vector<8x64xf32>
    %51 = arith.subf %36, %50 : vector<8x64xf32>
    %cst_24 = arith.constant 9.99999974E-6 : f32
    %52 = vector.broadcast %cst_24 : f32 to vector<8x1xf32>
    %53 = arith.addf %49, %52 : vector<8x1xf32>
    %54 = math.rsqrt %53 : vector<8x1xf32>
    %55 = vector.broadcast %54 : vector<8x1xf32> to vector<8x64xf32>
    %56 = arith.mulf %51, %55 : vector<8x64xf32>
    %57 = vector.broadcast %37 : vector<1x64xf32> to vector<8x64xf32>
    %58 = arith.mulf %56, %57 : vector<8x64xf32>
    %59 = vector.broadcast %38 : vector<1x64xf32> to vector<8x64xf32>
    %60 = arith.addf %58, %59 : vector<8x64xf32>
    %cst_25 = arith.constant 0.000000e+00 : f32
    %61 = vector.broadcast %cst_25 : f32 to vector<8x64xf32>
    %62 = arith.maximumf %60, %61 : vector<8x64xf32>
    %63 = vector.broadcast %0 : vector<8x1xf32> to vector<8x64xf32>
    %64 = arith.mulf %35, %63 : vector<8x64xf32>
    %65 = vector.broadcast %1 : vector<8x1xf32> to vector<8x64xf32>
    %66 = arith.mulf %62, %65 : vector<8x64xf32>
    %67 = tpu.concatenate %64, %66 in 1 : vector<8x64xf32>, vector<8x64xf32> -> vector<8x128xf32>
    %68 = arith.truncf %67 : vector<8x128xf32> to vector<8x128xbf16>
    %c0_26 = arith.constant 0 : index
    %c0_27 = arith.constant 0 : index
    %69 = vector.load %arg5[%c0_26, %c0_27] : memref<128x128xbf16, #tpu.memory_space<vmem>>, vector<128x128xbf16>
    %cst_28 = arith.constant dense<0.000000e+00> : vector<8x128xf32>
    %70 = tpu.matmul %68, %69, %cst_28 {dimension_numbers = #tpu.dot_dimension_numbers<[1], [0], [0], [1], [0, 0, 1, 1], [], []>} : vector<8x128xbf16>, vector<128x128xbf16>, vector<8x128xf32> -> vector<8x128xf32>
    %c3 = arith.constant 3 : index
    %c0_29 = arith.constant 0 : index
    %71 = vector.load %arg3[%c3, %c0_29] : memref<24x128xf32, #tpu.memory_space<vmem>>, vector<1x128xf32>
    %72 = vector.broadcast %71 : vector<1x128xf32> to vector<8x128xf32>
    %73 = arith.addf %70, %72 : vector<8x128xf32>
    %74 = arith.truncf %73 : vector<8x128xf32> to vector<8x128xbf16>
    %c0_30 = arith.constant 0 : index
    %c0_31 = arith.constant 0 : index
    %75 = vector.load %arg6[%c0_30, %c0_31] : memref<128x64xbf16, #tpu.memory_space<vmem>>, vector<128x64xbf16>
    %cst_32 = arith.constant dense<0.000000e+00> : vector<8x64xf32>
    %76 = tpu.matmul %74, %75, %cst_32 {dimension_numbers = #tpu.dot_dimension_numbers<[1], [0], [0], [1], [0, 0, 1, 1], [], []>} : vector<8x128xbf16>, vector<128x64xbf16>, vector<8x64xf32> -> vector<8x64xf32>
    %c4 = arith.constant 4 : index
    %c0_33 = arith.constant 0 : index
    %77 = vector.load %arg3[%c4, %c0_33] : memref<24x128xf32, #tpu.memory_space<vmem>>, vector<1x64xf32>
    %78 = vector.broadcast %77 : vector<1x64xf32> to vector<8x64xf32>
    %79 = arith.addf %76, %78 : vector<8x64xf32>
    %80 = math.tanh %79 : vector<8x64xf32>
    %c4_34 = arith.constant 4 : index
    %c64_35 = arith.constant 64 : index
    %81 = vector.load %arg3[%c4_34, %c64_35] : memref<24x128xf32, #tpu.memory_space<vmem>>, vector<1x64xf32>
    %82 = vector.broadcast %81 : vector<1x64xf32> to vector<8x64xf32>
    %83 = arith.mulf %80, %82 : vector<8x64xf32>
    %cst_36 = arith.constant dense<0.000000e+00> : vector<8xf32>
    %84 = vector.multi_reduction <add>, %83, %cst_36 [1] : vector<8x64xf32> to vector<8xf32>
    %85 = vector.shape_cast %84 : vector<8xf32> to vector<8x1xf32>
    %c5 = arith.constant 5 : index
    %c0_37 = arith.constant 0 : index
    %86 = vector.load %arg3[%c5, %c0_37] : memref<24x128xf32, #tpu.memory_space<vmem>>, vector<1x1xf32>
    %87 = vector.broadcast %86 : vector<1x1xf32> to vector<8x1xf32>
    %88 = arith.addf %85, %87 : vector<8x1xf32>
    %89 = arith.negf %88 : vector<8x1xf32>
    %90 = math.exp %89 : vector<8x1xf32>
    %cst_38 = arith.constant 1.000000e+00 : f32
    %91 = vector.broadcast %cst_38 : f32 to vector<8x1xf32>
    %92 = arith.addf %91, %90 : vector<8x1xf32>
    %93 = arith.divf %91, %92 : vector<8x1xf32>
    %94 = vector.extract_strided_slice %73 {offsets = [0, 0], sizes = [8, 64], strides = [1, 1]} : vector<8x128xf32> to vector<8x64xf32>
    %95 = vector.extract_strided_slice %73 {offsets = [0, 64], sizes = [8, 64], strides = [1, 1]} : vector<8x128xf32> to vector<8x64xf32>
    %96 = vector.broadcast %93 : vector<8x1xf32> to vector<8x64xf32>
    %97 = arith.mulf %96, %94 : vector<8x64xf32>
    %cst_39 = arith.constant 1.000000e+00 : f32
    %98 = vector.broadcast %cst_39 : f32 to vector<8x1xf32>
    %99 = arith.subf %98, %93 : vector<8x1xf32>
    %100 = vector.broadcast %99 : vector<8x1xf32> to vector<8x64xf32>
    %101 = arith.mulf %100, %95 : vector<8x64xf32>
    %102 = arith.addf %97, %101 : vector<8x64xf32>
    %103 = arith.mulf %0, %1 : vector<8x1xf32>
    %cst_40 = arith.constant 1.000000e+00 : f32
    %104 = vector.broadcast %cst_40 : f32 to vector<8x1xf32>
    %105 = arith.subf %104, %1 : vector<8x1xf32>
    %106 = arith.mulf %0, %105 : vector<8x1xf32>
    %cst_41 = arith.constant 1.000000e+00 : f32
    %107 = vector.broadcast %cst_41 : f32 to vector<8x1xf32>
    %108 = arith.subf %107, %0 : vector<8x1xf32>
    %109 = arith.mulf %108, %1 : vector<8x1xf32>
    %110 = vector.broadcast %103 : vector<8x1xf32> to vector<8x64xf32>
    %111 = arith.mulf %110, %102 : vector<8x64xf32>
    %112 = vector.broadcast %106 : vector<8x1xf32> to vector<8x64xf32>
    %113 = arith.mulf %112, %64 : vector<8x64xf32>
    %114 = arith.addf %111, %113 : vector<8x64xf32>
    %115 = vector.broadcast %109 : vector<8x1xf32> to vector<8x64xf32>
    %116 = arith.mulf %115, %66 : vector<8x64xf32>
    %117 = arith.addf %114, %116 : vector<8x64xf32>
    %118 = arith.truncf %117 : vector<8x64xf32> to vector<8x64xbf16>
    %c0_42 = arith.constant 0 : index
    %c0_43 = arith.constant 0 : index
    %c0_44 = arith.constant 0 : index
    %119 = vector.load %arg7[%c0_42, %c0_43, %c0_44] : memref<2x64x64xbf16, #tpu.memory_space<vmem>>, vector<1x64x64xbf16>
    %120 = vector.shape_cast %119 : vector<1x64x64xbf16> to vector<64x64xbf16>
    %cst_45 = arith.constant dense<0.000000e+00> : vector<8x64xf32>
    %121 = tpu.matmul %118, %120, %cst_45 {dimension_numbers = #tpu.dot_dimension_numbers<[1], [0], [0], [1], [0, 0, 1, 1], [], []>} : vector<8x64xbf16>, vector<64x64xbf16>, vector<8x64xf32> -> vector<8x64xf32>
    %c6 = arith.constant 6 : index
    %c0_46 = arith.constant 0 : index
    %122 = vector.load %arg3[%c6, %c0_46] : memref<24x128xf32, #tpu.memory_space<vmem>>, vector<1x64xf32>
    %123 = vector.broadcast %122 : vector<1x64xf32> to vector<8x64xf32>
    %124 = arith.addf %121, %123 : vector<8x64xf32>
    %125 = arith.addf %117, %124 : vector<8x64xf32>
    %c6_47 = arith.constant 6 : index
    %c64_48 = arith.constant 64 : index
    %126 = vector.load %arg3[%c6_47, %c64_48] : memref<24x128xf32, #tpu.memory_space<vmem>>, vector<1x64xf32>
    %c7 = arith.constant 7 : index
    %c0_49 = arith.constant 0 : index
    %127 = vector.load %arg3[%c7, %c0_49] : memref<24x128xf32, #tpu.memory_space<vmem>>, vector<1x64xf32>
    %cst_50 = arith.constant dense<0.000000e+00> : vector<8xf32>
    %128 = vector.multi_reduction <add>, %125, %cst_50 [1] : vector<8x64xf32> to vector<8xf32>
    %129 = vector.shape_cast %128 : vector<8xf32> to vector<8x1xf32>
    %cst_51 = arith.constant 6.400000e+01 : f32
    %130 = vector.broadcast %cst_51 : f32 to vector<8x1xf32>
    %131 = arith.divf %129, %130 : vector<8x1xf32>
    %132 = vector.broadcast %131 : vector<8x1xf32> to vector<8x64xf32>
    %133 = arith.subf %125, %132 : vector<8x64xf32>
    %134 = arith.mulf %133, %133 : vector<8x64xf32>
    %cst_52 = arith.constant dense<0.000000e+00> : vector<8xf32>
    %135 = vector.multi_reduction <add>, %134, %cst_52 [1] : vector<8x64xf32> to vector<8xf32>
    %136 = vector.shape_cast %135 : vector<8xf32> to vector<8x1xf32>
    %cst_53 = arith.constant 6.400000e+01 : f32
    %137 = vector.broadcast %cst_53 : f32 to vector<8x1xf32>
    %138 = arith.divf %136, %137 : vector<8x1xf32>
    %139 = vector.broadcast %131 : vector<8x1xf32> to vector<8x64xf32>
    %140 = arith.subf %125, %139 : vector<8x64xf32>
    %cst_54 = arith.constant 9.99999974E-6 : f32
    %141 = vector.broadcast %cst_54 : f32 to vector<8x1xf32>
    %142 = arith.addf %138, %141 : vector<8x1xf32>
    %143 = math.rsqrt %142 : vector<8x1xf32>
    %144 = vector.broadcast %143 : vector<8x1xf32> to vector<8x64xf32>
    %145 = arith.mulf %140, %144 : vector<8x64xf32>
    %146 = vector.broadcast %126 : vector<1x64xf32> to vector<8x64xf32>
    %147 = arith.mulf %145, %146 : vector<8x64xf32>
    %148 = vector.broadcast %127 : vector<1x64xf32> to vector<8x64xf32>
    %149 = arith.addf %147, %148 : vector<8x64xf32>
    %150 = arith.truncf %149 : vector<8x64xf32> to vector<8x64xbf16>
    %c0_55 = arith.constant 0 : index
    %c0_56 = arith.constant 0 : index
    %c0_57 = arith.constant 0 : index
    %151 = vector.load %arg8[%c0_55, %c0_56, %c0_57] : memref<2x64x128xbf16, #tpu.memory_space<vmem>>, vector<1x64x128xbf16>
    %152 = vector.shape_cast %151 : vector<1x64x128xbf16> to vector<64x128xbf16>
    %cst_58 = arith.constant dense<0.000000e+00> : vector<8x128xf32>
    %153 = tpu.matmul %150, %152, %cst_58 {dimension_numbers = #tpu.dot_dimension_numbers<[1], [0], [0], [1], [0, 0, 1, 1], [], []>} : vector<8x64xbf16>, vector<64x128xbf16>, vector<8x128xf32> -> vector<8x128xf32>
    %c8 = arith.constant 8 : index
    %c0_59 = arith.constant 0 : index
    %154 = vector.load %arg3[%c8, %c0_59] : memref<24x128xf32, #tpu.memory_space<vmem>>, vector<1x128xf32>
    %155 = vector.broadcast %154 : vector<1x128xf32> to vector<8x128xf32>
    %156 = arith.addf %153, %155 : vector<8x128xf32>
    %cst_60 = arith.constant 0.000000e+00 : f32
    %157 = vector.broadcast %cst_60 : f32 to vector<8x128xf32>
    %158 = arith.maximumf %156, %157 : vector<8x128xf32>
    %159 = arith.truncf %158 : vector<8x128xf32> to vector<8x128xbf16>
    %c0_61 = arith.constant 0 : index
    %c0_62 = arith.constant 0 : index
    %c0_63 = arith.constant 0 : index
    %160 = vector.load %arg9[%c0_61, %c0_62, %c0_63] : memref<2x128x64xbf16, #tpu.memory_space<vmem>>, vector<1x128x64xbf16>
    %161 = vector.shape_cast %160 : vector<1x128x64xbf16> to vector<128x64xbf16>
    %cst_64 = arith.constant dense<0.000000e+00> : vector<8x64xf32>
    %162 = tpu.matmul %159, %161, %cst_64 {dimension_numbers = #tpu.dot_dimension_numbers<[1], [0], [0], [1], [0, 0, 1, 1], [], []>} : vector<8x128xbf16>, vector<128x64xbf16>, vector<8x64xf32> -> vector<8x64xf32>
    %c9 = arith.constant 9 : index
    %c0_65 = arith.constant 0 : index
    %163 = vector.load %arg3[%c9, %c0_65] : memref<24x128xf32, #tpu.memory_space<vmem>>, vector<1x64xf32>
    %164 = vector.broadcast %163 : vector<1x64xf32> to vector<8x64xf32>
    %165 = arith.addf %162, %164 : vector<8x64xf32>
    %166 = arith.addf %149, %165 : vector<8x64xf32>
    %c7_66 = arith.constant 7 : index
    %c64_67 = arith.constant 64 : index
    %167 = vector.load %arg3[%c7_66, %c64_67] : memref<24x128xf32, #tpu.memory_space<vmem>>, vector<1x64xf32>
    %c9_68 = arith.constant 9 : index
    %c64_69 = arith.constant 64 : index
    %168 = vector.load %arg3[%c9_68, %c64_69] : memref<24x128xf32, #tpu.memory_space<vmem>>, vector<1x64xf32>
    %cst_70 = arith.constant dense<0.000000e+00> : vector<8xf32>
    %169 = vector.multi_reduction <add>, %166, %cst_70 [1] : vector<8x64xf32> to vector<8xf32>
    %170 = vector.shape_cast %169 : vector<8xf32> to vector<8x1xf32>
    %cst_71 = arith.constant 6.400000e+01 : f32
    %171 = vector.broadcast %cst_71 : f32 to vector<8x1xf32>
    %172 = arith.divf %170, %171 : vector<8x1xf32>
    %173 = vector.broadcast %172 : vector<8x1xf32> to vector<8x64xf32>
    %174 = arith.subf %166, %173 : vector<8x64xf32>
    %175 = arith.mulf %174, %174 : vector<8x64xf32>
    %cst_72 = arith.constant dense<0.000000e+00> : vector<8xf32>
    %176 = vector.multi_reduction <add>, %175, %cst_72 [1] : vector<8x64xf32> to vector<8xf32>
    %177 = vector.shape_cast %176 : vector<8xf32> to vector<8x1xf32>
    %cst_73 = arith.constant 6.400000e+01 : f32
    %178 = vector.broadcast %cst_73 : f32 to vector<8x1xf32>
    %179 = arith.divf %177, %178 : vector<8x1xf32>
    %180 = vector.broadcast %172 : vector<8x1xf32> to vector<8x64xf32>
    %181 = arith.subf %166, %180 : vector<8x64xf32>
    %cst_74 = arith.constant 9.99999974E-6 : f32
    %182 = vector.broadcast %cst_74 : f32 to vector<8x1xf32>
    %183 = arith.addf %179, %182 : vector<8x1xf32>
    %184 = math.rsqrt %183 : vector<8x1xf32>
    %185 = vector.broadcast %184 : vector<8x1xf32> to vector<8x64xf32>
    %186 = arith.mulf %181, %185 : vector<8x64xf32>
    %187 = vector.broadcast %167 : vector<1x64xf32> to vector<8x64xf32>
    %188 = arith.mulf %186, %187 : vector<8x64xf32>
    %189 = vector.broadcast %168 : vector<1x64xf32> to vector<8x64xf32>
    %190 = arith.addf %188, %189 : vector<8x64xf32>
    %191 = arith.truncf %190 : vector<8x64xf32> to vector<8x64xbf16>
    %c1_75 = arith.constant 1 : index
    %c0_76 = arith.constant 0 : index
    %c0_77 = arith.constant 0 : index
    %192 = vector.load %arg7[%c1_75, %c0_76, %c0_77] : memref<2x64x64xbf16, #tpu.memory_space<vmem>>, vector<1x64x64xbf16>
    %193 = vector.shape_cast %192 : vector<1x64x64xbf16> to vector<64x64xbf16>
    %cst_78 = arith.constant dense<0.000000e+00> : vector<8x64xf32>
    %194 = tpu.matmul %191, %193, %cst_78 {dimension_numbers = #tpu.dot_dimension_numbers<[1], [0], [0], [1], [0, 0, 1, 1], [], []>} : vector<8x64xbf16>, vector<64x64xbf16>, vector<8x64xf32> -> vector<8x64xf32>
    %c10 = arith.constant 10 : index
    %c0_79 = arith.constant 0 : index
    %195 = vector.load %arg3[%c10, %c0_79] : memref<24x128xf32, #tpu.memory_space<vmem>>, vector<1x64xf32>
    %196 = vector.broadcast %195 : vector<1x64xf32> to vector<8x64xf32>
    %197 = arith.addf %194, %196 : vector<8x64xf32>
    %198 = arith.addf %190, %197 : vector<8x64xf32>
    %c10_80 = arith.constant 10 : index
    %c64_81 = arith.constant 64 : index
    %199 = vector.load %arg3[%c10_80, %c64_81] : memref<24x128xf32, #tpu.memory_space<vmem>>, vector<1x64xf32>
    %c11 = arith.constant 11 : index
    %c0_82 = arith.constant 0 : index
    %200 = vector.load %arg3[%c11, %c0_82] : memref<24x128xf32, #tpu.memory_space<vmem>>, vector<1x64xf32>
    %cst_83 = arith.constant dense<0.000000e+00> : vector<8xf32>
    %201 = vector.multi_reduction <add>, %198, %cst_83 [1] : vector<8x64xf32> to vector<8xf32>
    %202 = vector.shape_cast %201 : vector<8xf32> to vector<8x1xf32>
    %cst_84 = arith.constant 6.400000e+01 : f32
    %203 = vector.broadcast %cst_84 : f32 to vector<8x1xf32>
    %204 = arith.divf %202, %203 : vector<8x1xf32>
    %205 = vector.broadcast %204 : vector<8x1xf32> to vector<8x64xf32>
    %206 = arith.subf %198, %205 : vector<8x64xf32>
    %207 = arith.mulf %206, %206 : vector<8x64xf32>
    %cst_85 = arith.constant dense<0.000000e+00> : vector<8xf32>
    %208 = vector.multi_reduction <add>, %207, %cst_85 [1] : vector<8x64xf32> to vector<8xf32>
    %209 = vector.shape_cast %208 : vector<8xf32> to vector<8x1xf32>
    %cst_86 = arith.constant 6.400000e+01 : f32
    %210 = vector.broadcast %cst_86 : f32 to vector<8x1xf32>
    %211 = arith.divf %209, %210 : vector<8x1xf32>
    %212 = vector.broadcast %204 : vector<8x1xf32> to vector<8x64xf32>
    %213 = arith.subf %198, %212 : vector<8x64xf32>
    %cst_87 = arith.constant 9.99999974E-6 : f32
    %214 = vector.broadcast %cst_87 : f32 to vector<8x1xf32>
    %215 = arith.addf %211, %214 : vector<8x1xf32>
    %216 = math.rsqrt %215 : vector<8x1xf32>
    %217 = vector.broadcast %216 : vector<8x1xf32> to vector<8x64xf32>
    %218 = arith.mulf %213, %217 : vector<8x64xf32>
    %219 = vector.broadcast %199 : vector<1x64xf32> to vector<8x64xf32>
    %220 = arith.mulf %218, %219 : vector<8x64xf32>
    %221 = vector.broadcast %200 : vector<1x64xf32> to vector<8x64xf32>
    %222 = arith.addf %220, %221 : vector<8x64xf32>
    %223 = arith.truncf %222 : vector<8x64xf32> to vector<8x64xbf16>
    %c1_88 = arith.constant 1 : index
    %c0_89 = arith.constant 0 : index
    %c0_90 = arith.constant 0 : index
    %224 = vector.load %arg8[%c1_88, %c0_89, %c0_90] : memref<2x64x128xbf16, #tpu.memory_space<vmem>>, vector<1x64x128xbf16>
    %225 = vector.shape_cast %224 : vector<1x64x128xbf16> to vector<64x128xbf16>
    %cst_91 = arith.constant dense<0.000000e+00> : vector<8x128xf32>
    %226 = tpu.matmul %223, %225, %cst_91 {dimension_numbers = #tpu.dot_dimension_numbers<[1], [0], [0], [1], [0, 0, 1, 1], [], []>} : vector<8x64xbf16>, vector<64x128xbf16>, vector<8x128xf32> -> vector<8x128xf32>
    %c12 = arith.constant 12 : index
    %c0_92 = arith.constant 0 : index
    %227 = vector.load %arg3[%c12, %c0_92] : memref<24x128xf32, #tpu.memory_space<vmem>>, vector<1x128xf32>
    %228 = vector.broadcast %227 : vector<1x128xf32> to vector<8x128xf32>
    %229 = arith.addf %226, %228 : vector<8x128xf32>
    %cst_93 = arith.constant 0.000000e+00 : f32
    %230 = vector.broadcast %cst_93 : f32 to vector<8x128xf32>
    %231 = arith.maximumf %229, %230 : vector<8x128xf32>
    %232 = arith.truncf %231 : vector<8x128xf32> to vector<8x128xbf16>
    %c1_94 = arith.constant 1 : index
    %c0_95 = arith.constant 0 : index
    %c0_96 = arith.constant 0 : index
    %233 = vector.load %arg9[%c1_94, %c0_95, %c0_96] : memref<2x128x64xbf16, #tpu.memory_space<vmem>>, vector<1x128x64xbf16>
    %234 = vector.shape_cast %233 : vector<1x128x64xbf16> to vector<128x64xbf16>
    %cst_97 = arith.constant dense<0.000000e+00> : vector<8x64xf32>
    %235 = tpu.matmul %232, %234, %cst_97 {dimension_numbers = #tpu.dot_dimension_numbers<[1], [0], [0], [1], [0, 0, 1, 1], [], []>} : vector<8x128xbf16>, vector<128x64xbf16>, vector<8x64xf32> -> vector<8x64xf32>
    %c13 = arith.constant 13 : index
    %c0_98 = arith.constant 0 : index
    %236 = vector.load %arg3[%c13, %c0_98] : memref<24x128xf32, #tpu.memory_space<vmem>>, vector<1x64xf32>
    %237 = vector.broadcast %236 : vector<1x64xf32> to vector<8x64xf32>
    %238 = arith.addf %235, %237 : vector<8x64xf32>
    %239 = arith.addf %222, %238 : vector<8x64xf32>
    %c11_99 = arith.constant 11 : index
    %c64_100 = arith.constant 64 : index
    %240 = vector.load %arg3[%c11_99, %c64_100] : memref<24x128xf32, #tpu.memory_space<vmem>>, vector<1x64xf32>
    %c13_101 = arith.constant 13 : index
    %c64_102 = arith.constant 64 : index
    %241 = vector.load %arg3[%c13_101, %c64_102] : memref<24x128xf32, #tpu.memory_space<vmem>>, vector<1x64xf32>
    %cst_103 = arith.constant dense<0.000000e+00> : vector<8xf32>
    %242 = vector.multi_reduction <add>, %239, %cst_103 [1] : vector<8x64xf32> to vector<8xf32>
    %243 = vector.shape_cast %242 : vector<8xf32> to vector<8x1xf32>
    %cst_104 = arith.constant 6.400000e+01 : f32
    %244 = vector.broadcast %cst_104 : f32 to vector<8x1xf32>
    %245 = arith.divf %243, %244 : vector<8x1xf32>
    %246 = vector.broadcast %245 : vector<8x1xf32> to vector<8x64xf32>
    %247 = arith.subf %239, %246 : vector<8x64xf32>
    %248 = arith.mulf %247, %247 : vector<8x64xf32>
    %cst_105 = arith.constant dense<0.000000e+00> : vector<8xf32>
    %249 = vector.multi_reduction <add>, %248, %cst_105 [1] : vector<8x64xf32> to vector<8xf32>
    %250 = vector.shape_cast %249 : vector<8xf32> to vector<8x1xf32>
    %cst_106 = arith.constant 6.400000e+01 : f32
    %251 = vector.broadcast %cst_106 : f32 to vector<8x1xf32>
    %252 = arith.divf %250, %251 : vector<8x1xf32>
    %253 = vector.broadcast %245 : vector<8x1xf32> to vector<8x64xf32>
    %254 = arith.subf %239, %253 : vector<8x64xf32>
    %cst_107 = arith.constant 9.99999974E-6 : f32
    %255 = vector.broadcast %cst_107 : f32 to vector<8x1xf32>
    %256 = arith.addf %252, %255 : vector<8x1xf32>
    %257 = math.rsqrt %256 : vector<8x1xf32>
    %258 = vector.broadcast %257 : vector<8x1xf32> to vector<8x64xf32>
    %259 = arith.mulf %254, %258 : vector<8x64xf32>
    %260 = vector.broadcast %240 : vector<1x64xf32> to vector<8x64xf32>
    %261 = arith.mulf %259, %260 : vector<8x64xf32>
    %262 = vector.broadcast %241 : vector<1x64xf32> to vector<8x64xf32>
    %263 = arith.addf %261, %262 : vector<8x64xf32>
    %264 = arith.truncf %263 : vector<8x64xf32> to vector<8x64xbf16>
    %c0_108 = arith.constant 0 : index
    %c0_109 = arith.constant 0 : index
    %265 = vector.load %arg10[%c0_108, %c0_109] : memref<64x128xbf16, #tpu.memory_space<vmem>>, vector<64x128xbf16>
    %cst_110 = arith.constant dense<0.000000e+00> : vector<8x128xf32>
    %266 = tpu.matmul %264, %265, %cst_110 {dimension_numbers = #tpu.dot_dimension_numbers<[1], [0], [0], [1], [0, 0, 1, 1], [], []>} : vector<8x64xbf16>, vector<64x128xbf16>, vector<8x128xf32> -> vector<8x128xf32>
    %c14 = arith.constant 14 : index
    %c0_111 = arith.constant 0 : index
    %267 = vector.load %arg3[%c14, %c0_111] : memref<24x128xf32, #tpu.memory_space<vmem>>, vector<1x128xf32>
    %268 = vector.broadcast %267 : vector<1x128xf32> to vector<8x128xf32>
    %269 = arith.addf %266, %268 : vector<8x128xf32>
    %cst_112 = arith.constant 0.000000e+00 : f32
    %270 = vector.broadcast %cst_112 : f32 to vector<8x128xf32>
    %271 = arith.maximumf %269, %270 : vector<8x128xf32>
    %272 = arith.truncf %271 : vector<8x128xf32> to vector<8x128xbf16>
    %c0_113 = arith.constant 0 : index
    %c0_114 = arith.constant 0 : index
    %273 = vector.load %arg11[%c0_113, %c0_114] : memref<128x128xbf16, #tpu.memory_space<vmem>>, vector<128x128xbf16>
    %cst_115 = arith.constant dense<0.000000e+00> : vector<8x128xf32>
    %274 = tpu.matmul %272, %273, %cst_115 {dimension_numbers = #tpu.dot_dimension_numbers<[1], [0], [0], [1], [0, 0, 1, 1], [], []>} : vector<8x128xbf16>, vector<128x128xbf16>, vector<8x128xf32> -> vector<8x128xf32>
    %c15 = arith.constant 15 : index
    %c0_116 = arith.constant 0 : index
    %275 = vector.load %arg3[%c15, %c0_116] : memref<24x128xf32, #tpu.memory_space<vmem>>, vector<1x128xf32>
    %276 = vector.broadcast %275 : vector<1x128xf32> to vector<8x128xf32>
    %277 = arith.addf %274, %276 : vector<8x128xf32>
    %cst_117 = arith.constant 0.000000e+00 : f32
    %278 = vector.broadcast %cst_117 : f32 to vector<8x128xf32>
    %279 = arith.maximumf %277, %278 : vector<8x128xf32>
    %280 = arith.truncf %279 : vector<8x128xf32> to vector<8x128xbf16>
    %c0_118 = arith.constant 0 : index
    %c0_119 = arith.constant 0 : index
    %281 = vector.load %arg12[%c0_118, %c0_119] : memref<128x64xbf16, #tpu.memory_space<vmem>>, vector<128x64xbf16>
    %cst_120 = arith.constant dense<0.000000e+00> : vector<8x64xf32>
    %282 = tpu.matmul %280, %281, %cst_120 {dimension_numbers = #tpu.dot_dimension_numbers<[1], [0], [0], [1], [0, 0, 1, 1], [], []>} : vector<8x128xbf16>, vector<128x64xbf16>, vector<8x64xf32> -> vector<8x64xf32>
    %c16 = arith.constant 16 : index
    %c0_121 = arith.constant 0 : index
    %283 = vector.load %arg3[%c16, %c0_121] : memref<24x128xf32, #tpu.memory_space<vmem>>, vector<1x64xf32>
    %284 = vector.broadcast %283 : vector<1x64xf32> to vector<8x64xf32>
    %285 = arith.addf %282, %284 : vector<8x64xf32>
    %286 = tpu.concatenate %263, %64, %66, %285 in 1 : vector<8x64xf32>, vector<8x64xf32>, vector<8x64xf32>, vector<8x64xf32> -> vector<8x256xf32>
    %287 = arith.truncf %286 : vector<8x256xf32> to vector<8x256xbf16>
    %c0_122 = arith.constant 0 : index
    %c0_123 = arith.constant 0 : index
    %288 = vector.load %arg13[%c0_122, %c0_123] : memref<8x256xbf16, #tpu.memory_space<vmem>>, vector<8x256xbf16>
    tpu.vector_store %arg13[%c0_122, %c0_123], %287 {strides = array<i32>} : memref<8x256xbf16, #tpu.memory_space<vmem>>, vector<8x256xbf16>,
    return
  }
  func.func @transform_0(%arg0: i32) -> (i32, i32) {
    %c0_i32 = arith.constant 0 : i32
    %c0_i32_0 = arith.constant 0 : i32
    return %arg0, %c0_i32 : i32, i32
  }
  func.func @transform_1(%arg0: i32) -> (i32, i32) {
    %c0_i32 = arith.constant 0 : i32
    %c0_i32_0 = arith.constant 0 : i32
    return %arg0, %c0_i32 : i32, i32
  }
  func.func @transform_2(%arg0: i32) -> (i32, i32) {
    %c0_i32 = arith.constant 0 : i32
    %c0_i32_0 = arith.constant 0 : i32
    %c0_i32_1 = arith.constant 0 : i32
    return %c0_i32, %c0_i32_0 : i32, i32
  }
  func.func @transform_3(%arg0: i32) -> (i32, i32) {
    %c0_i32 = arith.constant 0 : i32
    %c0_i32_0 = arith.constant 0 : i32
    %c0_i32_1 = arith.constant 0 : i32
    return %c0_i32, %c0_i32_0 : i32, i32
  }
  func.func @transform_4(%arg0: i32) -> (i32, i32) {
    %c0_i32 = arith.constant 0 : i32
    %c0_i32_0 = arith.constant 0 : i32
    %c0_i32_1 = arith.constant 0 : i32
    return %c0_i32, %c0_i32_0 : i32, i32
  }
  func.func @transform_5(%arg0: i32) -> (i32, i32) {
    %c0_i32 = arith.constant 0 : i32
    %c0_i32_0 = arith.constant 0 : i32
    %c0_i32_1 = arith.constant 0 : i32
    return %c0_i32, %c0_i32_0 : i32, i32
  }
  func.func @transform_6(%arg0: i32) -> (i32, i32, i32) {
    %c0_i32 = arith.constant 0 : i32
    %c0_i32_0 = arith.constant 0 : i32
    %c0_i32_1 = arith.constant 0 : i32
    %c0_i32_2 = arith.constant 0 : i32
    return %c0_i32, %c0_i32_0, %c0_i32_1 : i32, i32, i32
  }
  func.func @transform_7(%arg0: i32) -> (i32, i32, i32) {
    %c0_i32 = arith.constant 0 : i32
    %c0_i32_0 = arith.constant 0 : i32
    %c0_i32_1 = arith.constant 0 : i32
    %c0_i32_2 = arith.constant 0 : i32
    return %c0_i32, %c0_i32_0, %c0_i32_1 : i32, i32, i32
  }
  func.func @transform_8(%arg0: i32) -> (i32, i32, i32) {
    %c0_i32 = arith.constant 0 : i32
    %c0_i32_0 = arith.constant 0 : i32
    %c0_i32_1 = arith.constant 0 : i32
    %c0_i32_2 = arith.constant 0 : i32
    return %c0_i32, %c0_i32_0, %c0_i32_1 : i32, i32, i32
  }
  func.func @transform_9(%arg0: i32) -> (i32, i32) {
    %c0_i32 = arith.constant 0 : i32
    %c0_i32_0 = arith.constant 0 : i32
    %c0_i32_1 = arith.constant 0 : i32
    return %c0_i32, %c0_i32_0 : i32, i32
  }
  func.func @transform_10(%arg0: i32) -> (i32, i32) {
    %c0_i32 = arith.constant 0 : i32
    %c0_i32_0 = arith.constant 0 : i32
    %c0_i32_1 = arith.constant 0 : i32
    return %c0_i32, %c0_i32_0 : i32, i32
  }
  func.func @transform_11(%arg0: i32) -> (i32, i32) {
    %c0_i32 = arith.constant 0 : i32
    %c0_i32_0 = arith.constant 0 : i32
    %c0_i32_1 = arith.constant 0 : i32
    return %c0_i32, %c0_i32_0 : i32, i32
  }
  func.func @transform_12(%arg0: i32) -> (i32, i32) {
    %c0_i32 = arith.constant 0 : i32
    %c0_i32_0 = arith.constant 0 : i32
    return %arg0, %c0_i32 : i32, i32
  }
}

</mosaic_0001>

<bundles_post_ra>
// kernel: tpu_custom_call.1
= control target key start
LH: loop header
LB: loop body
LE: loop exit
PB: predicated region body
PF: predicated region fallthrough
CT: control target
= control target key end

     0   :  { %17 = vsyncpa [#allocation3], 0  ;;  %s2703_s0 = inlined_call_operand.hbm [shape: f32[8,128], index: 0, kind: input, shape index: {}]   ;;  %s2704_s1 = inlined_call_operand.vmem [shape: f32[8,2], index: 1, kind: input, shape index: {}]   ;;  %s2705_s2 = inlined_call_operand.hbm [shape: f32[24,128], index: 2, kind: input, shape index: {}]   ;;  %s2706_s3 = inlined_call_operand.vmem [shape: bf16[128,128], index: 3, kind: input, shape index: {}]   ;;  %s2707_s4 = inlined_call_operand.vmem [shape: bf16[128,128], index: 4, kind: input, shape index: {}]   ;;  %s2708_s5 = inlined_call_operand.vmem [shape: bf16[128,64], index: 5, kind: input, shape index: {}]   ;;  %s2709_s6 = inlined_call_operand.vmem [shape: bf16[2,64,64], index: 6, kind: input, shape index: {}]   ;;  %s2710_s7 = inlined_call_operand.vmem [shape: bf16[2,64,128], index: 7, kind: input, shape index: {}]   ;;  %s2711_s8 = inlined_call_operand.vmem [shape: bf16[2,128,64], index: 8, kind: input, shape index: {}]   ;;  %s2712_s9 = inlined_call_operand.hbm [shape: bf16[64,128], index: 9, kind: input, shape index: {}]   ;;  %s2713_s10 = inlined_call_operand.vmem [shape: bf16[128,128], index: 10, kind: input, shape index: {}]   ;;  %s2714_s11 = inlined_call_operand.vmem [shape: bf16[128,64], index: 11, kind: input, shape index: {}]   ;;  %s2715_s12 = inlined_call_operand.hbm [shape: bf16[8,256], index: 12, kind: output, shape index: {}]  }
   0x1   :  { %18 = vsyncpa [#allocation6], 0 }
   0x2   :  { %19 = vsyncpa [#allocation4], 0  ;;  %s2179_s21 = smov [#allocation5]   ;;  %s2085_s25 = scalar_lea.hbm %s2705_s2, 384 }
   0x3   :  { %s37_s22 = sshll.u32 %s2179_s21, 4  ;;  %p2086_p0 = scmp.ne.s32.totalorder %s2705_s2, %s2085_s25  ;;  %s38_s22 = int_to_ptr.vmem [resolvable:$true] %s37_s22 }
   0x4   :  { %p2089_p1 = scmp.lt.u32.totalorder %s2085_s25, %s2705_s2 }
   0x6   :  { %p2091_p2 = pnand %p2089_p1, %p2086_p0 }
   0x8   :  { %2094 = shalt.err (!%p2091_p2)
}
   0x9   :  { %s2095_s30 = scalar_lea.vmem %s38_s22, 384  ;;  %p2100_p4 = scmp.lt.s32.totalorder %s38_s22, %s38_s22 }
   0xa   :  { %p2096_p3 = scmp.ne.s32.totalorder %s38_s22, %s2095_s30  ;;  %p2101_p5 = scmp.lt.s32.totalorder %s2095_s30, %s2095_s30 }
   0xc   :  { %p2102_p6 = por %p2101_p5, %p2100_p4 }
   0xe   :  { %p2103_p7 = pnand %p2102_p6, %p2096_p3 }
  0x10   :  { %2106 = shalt.err (!%p2103_p7)
}
  0x11   :  { %s2180_s13 = smov 128   ;;  %s2181_s14 = smov 8  }
  0x12   :  { %43 = dma.hbm_to_vmem [thread:$0]  %s2705_s2, 384, %s38_s22, [#allocation6], %s2180_s13, %s2180_s13, %s2181_s14  }
  0x13   :  { %s2182_s17 = smov [#allocation2]   ;;  %s2183_s19 = smov [#allocation7]  }
  0x14   :  { %s26_s18 = sshll.u32 %s2182_s17, 4  ;;  %s61_s20 = sshll.u32 %s2183_s19, 4  ;;  %s27_s18 = int_to_ptr.vmem [resolvable:$true] %s26_s18  ;;  %s62_s20 = int_to_ptr.vmem [resolvable:$true] %s61_s20 }
  0x15   :  { %s2107_s24 = scalar_lea.hbm %s2703_s0, 128 }
  0x16   :  { %p2108_p8 = scmp.ne.s32.totalorder %s2703_s0, %s2107_s24  ;;  %p2111_p9 = scmp.lt.u32.totalorder %s2107_s24, %s2703_s0 }
  0x18   :  { %p2113_p10 = pnand %p2111_p9, %p2108_p8 }
  0x1a   :  { %2116 = shalt.err (!%p2113_p10)
}
  0x1b   :  { %s2117_s2 = scalar_lea.vmem %s27_s18, 128  ;;  %p2122_p12 = scmp.lt.s32.totalorder %s27_s18, %s27_s18 }
  0x1c   :  { %p2118_p11 = scmp.ne.s32.totalorder %s27_s18, %s2117_s2  ;;  %p2123_p13 = scmp.lt.s32.totalorder %s2117_s2, %s2117_s2 }
  0x1e   :  { %p2124_p0 = por %p2123_p13, %p2122_p12 }
  0x20   :  { %p2125_p1 = pnand %p2124_p0, %p2118_p11 }
  0x22   :  { %2128 = shalt.err (!%p2125_p1)
}
  0x23   :  { %29 = dma.hbm_to_vmem [thread:$0]  %s2703_s0, 128, %s27_s18, [#allocation3]  }
  0x24   :  { %s2129_s14 = scalar_lea.hbm %s2712_s9, 512 }
  0x25   :  { %p2130_p2 = scmp.ne.s32.totalorder %s2712_s9, %s2129_s14  ;;  %p2133_p3 = scmp.lt.u32.totalorder %s2129_s14, %s2712_s9 }
  0x27   :  { %p2135_p4 = pnand %p2133_p3, %p2130_p2 }
  0x29   :  { %2138 = shalt.err (!%p2135_p4)
}
  0x2a   :  { %s2139_s21 = scalar_lea.vmem %s62_s20, 512  ;;  %p2144_p6 = scmp.lt.s32.totalorder %s62_s20, %s62_s20 }
  0x2b   :  { %p2140_p5 = scmp.ne.s32.totalorder %s62_s20, %s2139_s21  ;;  %p2145_p7 = scmp.lt.s32.totalorder %s2139_s21, %s2139_s21 }
  0x2d   :  { %p2146_p8 = por %p2145_p7, %p2144_p6 }
  0x2f   :  { %p2147_p9 = pnand %p2146_p8, %p2140_p5 }
  0x31   :  { %2150 = shalt.err (!%p2147_p9)
}
  0x32   :  { %s2184_s0 = smov 64   ;;  %s2185_s18 = smov 4  }
  0x33   :  { %67 = dma.hbm_to_vmem [thread:$0]  %s2712_s9, 512, %s62_s20, [#allocation6], %s2184_s0, %s2184_s0, %s2185_s18  }
  0x34   :  { %2173 = dma.done.wait [#allocation3], 128  }
  0x35   :  { %2174 = vsyncadd [#allocation3], 4294967168 }
  0x36   :  { %2175 = dma.done.wait [#allocation6], 896  }
  0x37   :  { %2176 = vsyncadd [#allocation6], 4294966400  ;;  %v2186_v0 = vmov 0.0   ;;  %vm2187_vm0 = vmmov 0   ;;  %v1991_v1 = vld [vmem:[%s2706_s3] sm:$0xff]   ;;  %v1992_v2 = vld [vmem:[%s2706_s3 + $0x8] sm:$0xff]  }
  0x38   :  { %1770 = vmatprep.subr.bf16.mxu0 %v2186_v0  ;;  %1786 = vmatprep.mubr.msk.bf16.mxu0 %vm2187_vm0, %v2186_v0  ;;  %v1993_v3 = vld [vmem:[%s2706_s3 + $0x10] sm:$0xff]   ;;  %v1994_v4 = vld [vmem:[%s2706_s3 + $0x18] sm:$0xff]   ;;  %v1995_v5 = vld [vmem:[%s2706_s3 + $0x20] sm:$0xff]   ;;  %vm195_vm1 = vcmask 523264   ;;  %v2188_v20 = vmov 1   ;;  %v2189_v21 = vmov 0  }
  0x39   :  { %1790 = vmatprep.subr.bf16.mxu1 %v2186_v0  ;;  %1806 = vmatprep.mubr.msk.bf16.mxu1 %vm2187_vm0, %v2186_v0  ;;  %v1996_v6 = vld [vmem:[%s2706_s3 + $0x28] sm:$0xff]   ;;  %v1997_v7 = vld [vmem:[%s2706_s3 + $0x30] sm:$0xff]   ;;  %v1998_v8 = vld [vmem:[%s2706_s3 + $0x38] sm:$0xff]   ;;  %s2190_s28 = smov 127  }
  0x3a   :  { %1771 = vmatpush3.bf16.msra.mxu0 %v1991_v1  ;;  %v83_v9 = vld [vmem:[#allocation2] sm:$0xff]  ;;  %v1549_v11 = vld [vmem:[#allocation5] ss:$0 sm:$0xff]  ;;  %1984 = vset.pattern.permute.xlu1 %v2188_v20  ;;  %v2354_v32 = vld [vmem:[#allocation5 + $0x2] ss:$0 sm:$0xff] }
  0x3b   :  { %1772 = vmatprep.subr.bf16.mxu0 %v2186_v0  ;;  %v84_v10 = vpack.c.bf16 %v83_v9, %v83_v9  ;;  %1983 = vset.pattern.permute.xlu0 %v2189_v21  ;;  %v2351_v31 = vld [vmem:[%s2704_s1] sm:$0xff]  ;;  %v2358_v33 = vld [vmem:[#allocation5 + $0x1] ss:$0 sm:$0xff]  ;;  %v2001_v38 = vld [vmem:[%s2707_s4 + $0x10] sm:$0xff]  }
  0x3c   :  { %v1999_v34 = vld [vmem:[%s2707_s4] sm:$0xff]   ;;  %v2000_v37 = vld [vmem:[%s2707_s4 + $0x8] sm:$0xff]   ;;  %v2002_v39 = vld [vmem:[%s2707_s4 + $0x18] sm:$0xff]  }
  0x3d   :  { %1791 = vmatpush3.bf16.msra.mxu1 %v1999_v34  ;;  %v2003_v40 = vld [vmem:[%s2707_s4 + $0x20] sm:$0xff]   ;;  %v2004_v41 = vld [vmem:[%s2707_s4 + $0x28] sm:$0xff]   ;;  %v2005_v42 = vld [vmem:[%s2707_s4 + $0x30] sm:$0xff]  }
  0x3e   :  { %1773 = vmatpush3.bf16.msra.mxu0 %v1992_v2  ;;  %1792 = vmatprep.subr.bf16.mxu1 %v2186_v0  ;;  %v2006_v43 = vld [vmem:[%s2707_s4 + $0x38] sm:$0xff]   ;;  %v2007_v44 = vld [vmem:[%s2708_s5] sm:$0xff]   ;;  %v2008_v45 = vld [vmem:[%s2708_s5 + $0x8] sm:$0xff]  }
  0x3f   :  { %1774 = vmatprep.subr.bf16.mxu0 %v2186_v0  ;;  %v2009_v46 = vld [vmem:[%s2708_s5 + $0x10] sm:$0xff]   ;;  %v2010_v47 = vld [vmem:[%s2708_s5 + $0x18] sm:$0xff]   ;;  %v2011_v48 = vld [vmem:[%s2708_s5 + $0x20] sm:$0xff]  }
  0x40   :  { %v2012_v49 = vld [vmem:[%s2708_s5 + $0x28] sm:$0xff]   ;;  %v2013_v50 = vld [vmem:[%s2708_s5 + $0x30] sm:$0xff]  }
  0x41   :  { %1793 = vmatpush3.bf16.msra.mxu1 %v2000_v37 }
  0x42   :  { %1775 = vmatpush3.bf16.msra.mxu0 %v1993_v3  ;;  %1794 = vmatprep.subr.bf16.mxu1 %v2186_v0 }
  0x43   :  { %1776 = vmatprep.subr.bf16.mxu0 %v2186_v0 }
  0x45   :  { %1795 = vmatpush3.bf16.msra.mxu1 %v2001_v38 }
  0x46   :  { %1777 = vmatpush3.bf16.msra.mxu0 %v1994_v4  ;;  %1796 = vmatprep.subr.bf16.mxu1 %v2186_v0 }
  0x47   :  { %1778 = vmatprep.subr.bf16.mxu0 %v2186_v0 }
  0x49   :  { %1797 = vmatpush3.bf16.msra.mxu1 %v2002_v39  ;;  %v529_v39 = vsub.f32 1.0, %v2351_v31 }
  0x4a   :  { %1779 = vmatpush3.bf16.msra.mxu0 %v1995_v5  ;;  %1798 = vmatprep.subr.bf16.mxu1 %v2186_v0 }
  0x4b   :  { %1780 = vmatprep.subr.bf16.mxu0 %v2186_v0 }
  0x4d   :  { %1799 = vmatpush3.bf16.msra.mxu1 %v2003_v40 }
  0x4e   :  { %1781 = vmatpush3.bf16.msra.mxu0 %v1996_v6  ;;  %1800 = vmatprep.subr.bf16.mxu1 %v2186_v0 }
  0x4f   :  { %1782 = vmatprep.subr.bf16.mxu0 %v2186_v0 }
  0x51   :  { %1801 = vmatpush3.bf16.msra.mxu1 %v2004_v41 }
  0x52   :  { %1783 = vmatpush3.bf16.msra.mxu0 %v1997_v7  ;;  %1802 = vmatprep.subr.bf16.mxu1 %v2186_v0 }
  0x53   :  { %1784 = vmatprep.subr.bf16.mxu0 %v2186_v0 }
  0x55   :  { %1803 = vmatpush3.bf16.msra.mxu1 %v2005_v42 }
  0x56   :  { %1785 = vmatpush3.bf16.msra.mxu0 %v1998_v8  ;;  %1804 = vmatprep.subr.bf16.mxu1 %v2186_v0 }
  0x57   :  { %1810 = vmatprep.subr.bf16.mxu0 %v2186_v0 }
  0x59   :  { %1787 = vmatmul.mubr.bf16.vlgmr.msra.gmra.mrb[0].mxu0 %v84_v10  ;;  %1805 = vmatpush3.bf16.msra.mxu1 %v2006_v43  ;;  %v2015_v43 = vld [vmem:[%s2709_s6] sm:$0xff]  }
  0x5a   :  { %1826 = vmatprep.mubr.msk.bf16.mxu0 %vm2187_vm0, %v2186_v0  ;;  %1830 = vmatprep.subr.bf16.mxu1 %v2186_v0 }
  0x5b   :  { %1811 = vmatpush3.bf16.msra.mxu0 %v2007_v44  ;;  %v2016_v44 = vld [vmem:[%s2709_s6 + $0x8] sm:$0xff]  }
  0x5c   :  { %1812 = vmatprep.subr.bf16.mxu0 %v2186_v0 }
  0x5f   :  { %1813 = vmatpush3.bf16.msra.mxu0 %v2008_v45 }
  0x60   :  { %1814 = vmatprep.subr.bf16.mxu0 %v2186_v0 }
  0x63   :  { %1815 = vmatpush3.bf16.msra.mxu0 %v2009_v46 }
  0x64   :  { %1816 = vmatprep.subr.bf16.mxu0 %v2186_v0 }
  0x67   :  { %1817 = vmatpush3.bf16.msra.mxu0 %v2010_v47 }
  0x68   :  { %1818 = vmatprep.subr.bf16.mxu0 %v2186_v0 }
  0x6b   :  { %1819 = vmatpush3.bf16.msra.mxu0 %v2011_v48 }
  0x6c   :  { %1820 = vmatprep.subr.bf16.mxu0 %v2186_v0 }
  0x6f   :  { %1821 = vmatpush3.bf16.msra.mxu0 %v2012_v49  ;;  %v2017_v49 = vld [vmem:[%s2709_s6 + $0x10] sm:$0xff]  }
  0x70   :  { %1822 = vmatprep.subr.bf16.mxu0 %v2186_v0 }
  0x73   :  { %1823 = vmatpush3.bf16.msra.mxu0 %v2013_v50 }
  0x74   :  { %1824 = vmatprep.subr.bf16.mxu0 %v2186_v0 }
 0x12c   :  { %v188_v12 = vpop.f32.mrb[0].mxu0 }
 0x12d   :  { %v189_v13 = vadd.f32 %v1549_v11, %v188_v12  ;;  %v1788_v14 = vpop.f32.mrb[1].mxu0  ;;  %v2014_v12 = vld [vmem:[%s2708_s5 + $0x38] sm:$0xff]  }
 0x12e   :  { %v191_v15 = vpop.f32.mrb[2].mxu0  ;;  %1825 = vmatpush3.bf16.msra.mxu0 %v2014_v12  ;;  %v1560_v14 = vld [vmem:[#allocation5 + $0x3] ss:$0 sm:$0xff] }
 0x12f   :  { %223 = vrot.lane.b32.xlu0 %v189_v13, %s2184_s0  ;;  %v1789_v16 = vpop.f32.mrb[3].mxu0  ;;  %v196_v17 = vsel %vm195_vm1, %v189_v13, 0.0  ;;  %1854 = vmatprep.subr.bf16.mxu0 %v2186_v0 }
 0x130   :  { %197 = vadd.xlane.f32.xlu1 %v196_v17 }
 0x1a1   :  { %v224_v18 = vpop.permute.xlu0 %223 }
 0x1a2   :  { %v226_v19 = vsel %vm195_vm1, %v224_v18, 0.0 }
 0x1a3   :  { %227 = vadd.xlane.f32.xlu0 %v226_v19 }
 0x1bd   :  { %v198_v26 = vpop.xlane.xlu1 %197 }
 0x1be   :  { %v200_v27 = vmul.f32 0.015625, %v198_v26 }
 0x1c0   :  { %v2343_v28 = vsub.f32 %v189_v13, %v200_v27 }
 0x1c2   :  { %v202_v29 = vmul.f32 %v2343_v28, %v2343_v28 }
 0x1c4   :  { %v203_v30 = vsel %vm195_vm1, %v202_v29, 0.0 }
 0x230   :  { %v228_v22 = vpop.xlane.xlu0 %227 }
 0x231   :  { %v229_v23 = vmul.f32 0.015625, %v228_v22 }
 0x233   :  { %v2338_v24 = vsub.f32 %v189_v13, %v229_v23  ;;  %v1569_v13 = vld [vmem:[#allocation5 + $0x4] ss:$0 sm:$0xff] }
 0x235   :  { %v231_v25 = vmul.f32 %v2338_v24, %v2338_v24 }
 0x237   :  { %233 = vrot.lane.b32.xlu1 %v231_v25, %s2184_s0 }
 0x25b   :  { %204 = vadd.xlane.f32.xlu1 %v203_v30  ;;  %v1578_v30 = vld [vmem:[#allocation5 + $0x5] ss:$0 sm:$0xff] }
 0x26c   :  { %261 = vperm.xlu1 %1984, %v2351_v31  }
 0x270   :  { %248 = vrot.lane.b32.xlu1 %v2354_v32, %s2184_s0 }
 0x271   :  { %1985 = vset.pattern.permute.xlu1 %v2189_v21 }
 0x274   :  { %216 = vrot.lane.b32.xlu1 %v2358_v33, %s2184_s0 }
 0x278   :  { %488 = vrot.lane.b32.xlu1 %v1569_v13, %s2184_s0 }
 0x27c   :  { %525 = vrot.lane.b32.xlu1 %v2351_v31, %s2190_s28 }
 0x2a9   :  { %v234_v35 = vpop.permute.xlu1 %233 }
 0x2aa   :  { %v236_v36 = vsel %vm195_vm1, %v234_v35, 0.0 }
 0x2ab   :  { %237 = vadd.xlane.f32.xlu0 %v236_v36 }
 0x2c1   :  { %256 = vperm.xlu0 %1983, %v2351_v31  }
 0x2e8   :  { %v205_v51 = vpop.xlane.xlu1 %204 }
 0x2e9   :  { %v206_v52 = vmul.f32 0.015625, %v205_v51 }
 0x2eb   :  { %v207_v53 = vadd.f32 1e-05, %v206_v52  ;;  %v2018_v52 = vld [vmem:[%s2709_s6 + $0x18] sm:$0xff]  }
 0x2ec   :  { %v262_v56 = vpop.permute.xlu1 %261 }
 0x2ed   :  { %2067 = vrsqrt.f32 %v207_v53 }
 0x2f0   :  { %v249_v59 = vpop.permute.xlu1 %248 }
 0x2f4   :  { %v217_v63 = vpop.permute.xlu1 %216 }
 0x2f7   :  { %v2068_v58 = vpop.eup %2067 }
 0x2f8   :  { %v209_v60 = vmul.f32 %v2068_v58, %v2343_v28  ;;  %v489_v26 = vpop.permute.xlu1 %488 }
 0x2fa   :  { %v214_v61 = vmul.f32 %v2358_v33, %v209_v60 }
 0x2fc   :  { %v219_v2 = vadd.f32 %v217_v63, %v214_v61  ;;  %v526_v40 = vpop.permute.xlu1 %525 }
 0x2fd   :  { %v535_v41 = vmul.f32 %v529_v39, %v526_v40  ;;  %v528_v42 = vmul.f32 %v526_v40, %v2351_v31 }
 0x2fe   :  { %v220_v6 = vmax.f32 %v219_v2, 0.0 }
 0x338   :  { %v238_v54 = vpop.xlane.xlu0 %237 }
 0x339   :  { %v239_v55 = vmul.f32 0.015625, %v238_v54 }
 0x33b   :  { %v240_v57 = vadd.f32 1e-05, %v239_v55 }
 0x33d   :  { %2069 = vrsqrt.f32 %v240_v57 }
 0x340   :  { %v257_v5 = vpop.permute.xlu0 %256 }
 0x341   :  { %v2428_v8 = vmul.f32 %v257_v5, %v220_v6 }
 0x347   :  { %v2070_v62 = vpop.eup %2069 }
 0x348   :  { %v242_v1 = vmul.f32 %v2070_v62, %v2338_v24 }
 0x34a   :  { %v251_v3 = vmul.f32 %v249_v59, %v242_v1  ;;  %v1580_v1 = vld [vmem:[#allocation5 + $0x6] ss:$0 sm:$0xff] }
 0x34c   :  { %v252_v4 = vadd.f32 %v2354_v32, %v251_v3 }
 0x34e   :  { %v253_v7 = vmax.f32 %v252_v4, 0.0 }
 0x350   :  { %v2430_v9 = vmul.f32 %v262_v56, %v253_v7 }
 0x352   :  { %v265_v10 = vsel %vm195_vm1, %v2428_v8, %v2430_v9 }
 0x353   :  { %v266_v11 = vpack.c.bf16 %v265_v10, %v265_v10 }
 0x355   :  { %1807 = vmatmul.mubr.bf16.vlgmr.msra.gmra.mrb[0].mxu1 %v266_v11 }
 0x356   :  { %1838 = vmatprep.mubr.msk.bf16.mxu1 %vm2187_vm0, %v2186_v0  ;;  %1831 = vmatpush3.bf16.msra.mxu1 %v2015_v43 }
 0x357   :  { %1832 = vmatprep.subr.bf16.mxu1 %v2186_v0 }
 0x35a   :  { %1833 = vmatpush3.bf16.msra.mxu1 %v2016_v44 }
 0x35b   :  { %1834 = vmatprep.subr.bf16.mxu1 %v2186_v0 }
 0x35e   :  { %1835 = vmatpush3.bf16.msra.mxu1 %v2017_v49 }
 0x35f   :  { %1836 = vmatprep.subr.bf16.mxu1 %v2186_v0 }
 0x362   :  { %1837 = vmatpush3.bf16.msra.mxu1 %v2018_v52 }
 0x363   :  { %1842 = vmatprep.subr.bf16.mxu1 %v2186_v0 }
 0x428   :  { %v370_v15 = vpop.f32.mrb[0].mxu1 }
 0x429   :  { %v371_v16 = vadd.f32 %v1560_v14, %v370_v15  ;;  %v1808_v17 = vpop.f32.mrb[1].mxu1 }
 0x42a   :  { %v373_v18 = vpop.f32.mrb[2].mxu1  ;;  %v1586_v17 = vld [vmem:[#allocation5 + $0x7] ss:$0 sm:$0xff] }
 0x42b   :  { %v376_v19 = vpack.c.bf16 %v371_v16, %v371_v16  ;;  %v1809_v20 = vpop.f32.mrb[3].mxu1  ;;  %v2020_v18 = vld [vmem:[%s2710_s7 + $0x8] sm:$0xff]  }
 0x42c   :  { %v2022_v20 = vld [vmem:[%s2710_s7 + $0x18] sm:$0xff]  }
 0x42d   :  { %1827 = vmatmul.mubr.bf16.vlgmr.msra.gmra.mrb[4].mxu0 %v376_v19  ;;  %v2021_v19 = vld [vmem:[%s2710_s7 + $0x10] sm:$0xff]  }
 0x42e   :  { %1870 = vmatprep.mubr.msk.bf16.mxu0 %vm2187_vm0, %v2186_v0 }
 0x500   :  { %v480_v21 = vpop.f32.mrb[4].mxu0 }
 0x501   :  { %v481_v22 = vadd.f32 %v1569_v13, %v480_v21  ;;  %v1828_v23 = vpop.f32.mrb[5].mxu0  ;;  %v2023_v21 = vld [vmem:[%s2711_s8] sm:$0xff]  }
 0x502   :  { %v483_v24 = vpop.f32.mrb[6].mxu0  ;;  %1855 = vmatpush3.bf16.msra.mxu0 %v2023_v21  ;;  %v2025_v23 = vld [vmem:[%s2711_s8 + $0x10] sm:$0xff]  }
 0x503   :  { %2071 = vtanh.f32 %v481_v22  ;;  %v1829_v25 = vpop.f32.mrb[7].mxu0  ;;  %v2024_v22 = vld [vmem:[%s2711_s8 + $0x8] sm:$0xff]   ;;  %1856 = vmatprep.subr.bf16.mxu0 %v2186_v0  ;;  %v2026_v24 = vld [vmem:[%s2711_s8 + $0x18] sm:$0xff]  }
 0x504   :  { %v2027_v25 = vld [vmem:[%s2711_s8 + $0x20] sm:$0xff]  }
 0x506   :  { %1857 = vmatpush3.bf16.msra.mxu0 %v2024_v22 }
 0x507   :  { %1858 = vmatprep.subr.bf16.mxu0 %v2186_v0 }
 0x50a   :  { %1859 = vmatpush3.bf16.msra.mxu0 %v2025_v23 }
 0x50b   :  { %1860 = vmatprep.subr.bf16.mxu0 %v2186_v0 }
 0x50d   :  { %v2072_v27 = vpop.eup %2071 }
 0x50e   :  { %v491_v28 = vmul.f32 %v2072_v27, %v489_v26  ;;  %1861 = vmatpush3.bf16.msra.mxu0 %v2026_v24  ;;  %v2028_v26 = vld [vmem:[%s2711_s8 + $0x28] sm:$0xff]  }
 0x50f   :  { %1862 = vmatprep.subr.bf16.mxu0 %v2186_v0 }
 0x510   :  { %v492_v29 = vsel %vm195_vm1, %v491_v28, 0.0 }
 0x511   :  { %493 = vadd.xlane.f32.xlu0 %v492_v29 }
 0x512   :  { %1863 = vmatpush3.bf16.msra.mxu0 %v2027_v25  ;;  %v2035_v25 = vld [vmem:[%s2710_s7 + $0x20] sm:$0xff]  }
 0x513   :  { %1864 = vmatprep.subr.bf16.mxu0 %v2186_v0 }
 0x516   :  { %1865 = vmatpush3.bf16.msra.mxu0 %v2028_v26  ;;  %v2036_v26 = vld [vmem:[%s2710_s7 + $0x28] sm:$0xff]  }
 0x517   :  { %1866 = vmatprep.subr.bf16.mxu0 %v2186_v0 }
 0x59e   :  { %v494_v32 = vpop.xlane.xlu0 %493 }
 0x59f   :  { %v500_v33 = vadd.f32 %v1578_v30, %v494_v32 }
 0x5a1   :  { %v1579_v34 = vmul.f32 -1.442695, %v500_v33 }
 0x5a3   :  { %2073 = vpow2.f32 %v1579_v34 }
 0x5ad   :  { %v2074_v35 = vpop.eup %2073 }
 0x5ae   :  { %v504_v36 = vadd.f32 1.0, %v2074_v35 }
 0x5b0   :  { %2075 = vrcp.f32 %v504_v36 }
 0x5ba   :  { %v2076_v37 = vpop.eup %2075 }
 0x5bb   :  { %v513_v38 = vsub.f32 1.0, %v2076_v37 }
 0x5bd   :  { %516 = vperm.xlu1 %1985, %v513_v38   ;;  %v2030_v38 = vld [vmem:[%s2711_s8 + $0x38] sm:$0xff]  }
 0x5c1   :  { %531 = vrot.lane.b32.xlu1 %v529_v39, %s2190_s28  ;;  %v1587_v39 = vld [vmem:[#allocation5 + $0x8] ss:$0 sm:$0xff] }
 0x5c5   :  { %551 = vperm.xlu1 %1985, %v535_v41  }
 0x5c9   :  { %509 = vperm.xlu1 %1985, %v2076_v37   ;;  %v2029_v37 = vld [vmem:[%s2711_s8 + $0x30] sm:$0xff]  }
 0x5ca   :  { %1867 = vmatpush3.bf16.msra.mxu0 %v2029_v37 }
 0x5cb   :  { %1868 = vmatprep.subr.bf16.mxu0 %v2186_v0 }
 0x5cd   :  { %538 = vperm.xlu1 %1985, %v528_v42  }
 0x5ce   :  { %1869 = vmatpush3.bf16.msra.mxu0 %v2030_v38 }
 0x5cf   :  { %1898 = vmatprep.subr.bf16.mxu0 %v2186_v0 }
 0x63c   :  { %v517_v45 = vpop.permute.xlu1 %516 }
 0x63d   :  { %v519_v46 = vmul.f32 %v517_v45, %v371_v16 }
 0x63f   :  { %521 = vrot.lane.b32.xlu0 %v519_v46, %s2184_s0 }
 0x640   :  { %v532_v47 = vpop.permute.xlu1 %531 }
 0x641   :  { %v534_v48 = vmul.f32 %v532_v47, %v2351_v31  ;;  %v1593_v47 = vld [vmem:[#allocation5 + $0x9] ss:$0 sm:$0xff] }
 0x643   :  { %544 = vperm.xlu1 %1985, %v534_v48  }
 0x644   :  { %v552_v50 = vpop.permute.xlu1 %551 }
 0x645   :  { %v554_v51 = vmul.f32 %v552_v50, %v2430_v9 }
 0x647   :  { %556 = vrot.lane.b32.xlu1 %v554_v51, %s2184_s0 }
 0x648   :  { %v510_v31 = vpop.permute.xlu1 %509 }
 0x649   :  { %v512_v54 = vmul.f32 %v510_v31, %v371_v16  ;;  %v2019_v16 = vld [vmem:[%s2710_s7] sm:$0xff]  }
 0x64c   :  { %v539_v55 = vpop.permute.xlu1 %538 }
 0x6b1   :  { %v522_v53 = vpop.permute.xlu0 %521 }
 0x6b2   :  { %v524_v56 = vadd.f32 %v522_v53, %v512_v54 }
 0x6b4   :  { %v541_v58 = vmul.f32 %v539_v55, %v524_v56 }
 0x6c2   :  { %v545_v57 = vpop.permute.xlu1 %544 }
 0x6c3   :  { %v547_v59 = vmul.f32 %v545_v57, %v2428_v8 }
 0x6c5   :  { %v548_v60 = vadd.f32 %v547_v59, %v541_v58  ;;  %v2031_v59 = vld [vmem:[%s2709_s6 + $0x20] sm:$0xff]  }
 0x6c6   :  { %v557_v61 = vpop.permute.xlu1 %556 }
 0x6c7   :  { %v559_v62 = vadd.f32 %v557_v61, %v548_v60  ;;  %v2032_v60 = vld [vmem:[%s2709_s6 + $0x28] sm:$0xff]   ;;  %v2033_v61 = vld [vmem:[%s2709_s6 + $0x30] sm:$0xff]  }
 0x6c9   :  { %v560_v63 = vpack.c.bf16 %v559_v62, %v559_v62 }
 0x6cb   :  { %1839 = vmatmul.mubr.msk.bf16.vlgmr.msra.gmra.mrb[4].mxu1 %vm195_vm1, %v560_v63 }
 0x6cc   :  { %1850 = vmatprep.mubr.msk.bf16.mxu1 %vm2187_vm0, %v2186_v0  ;;  %1843 = vmatpush3.bf16.msra.mxu1 %v2019_v16 }
 0x6cd   :  { %1844 = vmatprep.subr.bf16.mxu1 %v2186_v0 }
 0x6d0   :  { %1845 = vmatpush3.bf16.msra.mxu1 %v2020_v18 }
 0x6d1   :  { %1846 = vmatprep.subr.bf16.mxu1 %v2186_v0 }
 0x6d4   :  { %1847 = vmatpush3.bf16.msra.mxu1 %v2021_v19 }
 0x6d5   :  { %1848 = vmatprep.subr.bf16.mxu1 %v2186_v0 }
 0x6d8   :  { %1849 = vmatpush3.bf16.msra.mxu1 %v2022_v20 }
 0x6d9   :  { %1874 = vmatprep.subr.bf16.mxu1 %v2186_v0 }
 0x79e   :  { %v635_v2 = vpop.f32.mrb[4].mxu1 }
 0x79f   :  { %v636_v3 = vadd.f32 %v1580_v1, %v635_v2  ;;  %v1840_v4 = vpop.f32.mrb[5].mxu1 }
 0x7a0   :  { %v638_v5 = vpop.f32.mrb[6].mxu1 }
 0x7a1   :  { %v1841_v6 = vpop.f32.mrb[7].mxu1  ;;  %v641_v7 = vadd.f32 %v636_v3, %v559_v62  ;;  %v2034_v62 = vld [vmem:[%s2709_s6 + $0x38] sm:$0xff]  }
 0x7a3   :  { %v643_v10 = vsel %vm195_vm1, %v641_v7, 0.0 }
 0x7a4   :  { %644 = vadd.xlane.f32.xlu1 %v643_v10 }
 0x7b5   :  { %657 = vrot.lane.b32.xlu1 %v1580_v1, %s2184_s0 }
 0x7b9   :  { %873 = vrot.lane.b32.xlu1 %v1586_v17, %s2184_s0 }
 0x831   :  { %v645_v11 = vpop.xlane.xlu1 %644 }
 0x832   :  { %v646_v12 = vmul.f32 0.015625, %v645_v11 }
 0x834   :  { %v647_v13 = vsub.f32 %v641_v7, %v646_v12  ;;  %v1610_v12 = vld [vmem:[#allocation5 + $0xa] ss:$0 sm:$0xff] }
 0x835   :  { %v658_v32 = vpop.permute.xlu1 %657 }
 0x836   :  { %v648_v14 = vmul.f32 %v647_v13, %v647_v13 }
 0x838   :  { %v649_v15 = vsel %vm195_vm1, %v648_v14, 0.0 }
 0x839   :  { %650 = vadd.xlane.f32.xlu0 %v649_v15  ;;  %v874_v4 = vpop.permute.xlu1 %873 }
 0x8c6   :  { %v651_v27 = vpop.xlane.xlu0 %650 }
 0x8c7   :  { %v652_v28 = vmul.f32 0.015625, %v651_v27  ;;  %v2037_v27 = vld [vmem:[%s2710_s7 + $0x30] sm:$0xff]  }
 0x8c9   :  { %v653_v29 = vadd.f32 1e-05, %v652_v28  ;;  %v2038_v28 = vld [vmem:[%s2710_s7 + $0x38] sm:$0xff]  }
 0x8cb   :  { %2077 = vrsqrt.f32 %v653_v29  ;;  %v2039_v29 = vld [vmem:[%s2711_s8 + $0x40] sm:$0xff]  }
 0x8d5   :  { %v2078_v30 = vpop.eup %2077 }
 0x8d6   :  { %v655_v33 = vmul.f32 %v2078_v30, %v647_v13  ;;  %v2040_v30 = vld [vmem:[%s2711_s8 + $0x48] sm:$0xff]  }
 0x8d8   :  { %v660_v34 = vmul.f32 %v658_v32, %v655_v33  ;;  %v2041_v32 = vld [vmem:[%s2711_s8 + $0x50] sm:$0xff]   ;;  %v2042_v33 = vld [vmem:[%s2711_s8 + $0x58] sm:$0xff]  }
 0x8da   :  { %v665_v35 = vadd.f32 %v1586_v17, %v660_v34  ;;  %v2043_v34 = vld [vmem:[%s2711_s8 + $0x60] sm:$0xff]  }
 0x8dc   :  { %v666_v36 = vpack.c.bf16 %v665_v35, %v665_v35 }
 0x8de   :  { %1851 = vmatmul.mubr.msk.bf16.vlgmr.msra.gmra.mrb[8].mxu1 %vm195_vm1, %v666_v36 }
 0x8df   :  { %1882 = vmatprep.mubr.msk.bf16.mxu1 %vm2187_vm0, %v2186_v0  ;;  %1875 = vmatpush3.bf16.msra.mxu1 %v2031_v59 }
 0x8e0   :  { %1876 = vmatprep.subr.bf16.mxu1 %v2186_v0 }
 0x8e3   :  { %1877 = vmatpush3.bf16.msra.mxu1 %v2032_v60 }
 0x8e4   :  { %1878 = vmatprep.subr.bf16.mxu1 %v2186_v0 }
 0x8e7   :  { %1879 = vmatpush3.bf16.msra.mxu1 %v2033_v61 }
 0x8e8   :  { %1880 = vmatprep.subr.bf16.mxu1 %v2186_v0 }
 0x8eb   :  { %1881 = vmatpush3.bf16.msra.mxu1 %v2034_v62 }
 0x8ec   :  { %1886 = vmatprep.subr.bf16.mxu1 %v2186_v0 }
 0x9b1   :  { %v741_v40 = vpop.f32.mrb[8].mxu1 }
 0x9b2   :  { %v742_v41 = vadd.f32 %v1587_v39, %v741_v40  ;;  %v1852_v42 = vpop.f32.mrb[9].mxu1 }
 0x9b3   :  { %v744_v43 = vpop.f32.mrb[10].mxu1  ;;  %v1616_v42 = vld [vmem:[#allocation5 + $0xb] ss:$0 sm:$0xff] }
 0x9b4   :  { %v747_v44 = vmax.f32 %v742_v41, 0.0  ;;  %v1853_v45 = vpop.f32.mrb[11].mxu1 }
 0x9b6   :  { %v748_v46 = vpack.c.bf16 %v747_v44, %v747_v44 }
 0x9b8   :  { %1871 = vmatmul.mubr.bf16.vlgmr.msra.gmra.mrb[8].mxu0 %v748_v46  ;;  %v2045_v46 = vld [vmem:[%s2711_s8 + $0x70] sm:$0xff]  }
 0x9b9   :  { %1914 = vmatprep.mubr.msk.bf16.mxu0 %vm2187_vm0, %v2186_v0  ;;  %1899 = vmatpush3.bf16.msra.mxu0 %v2039_v29  ;;  %v2060_v29 = vld [vmem:[%s2714_s11 + $0x8] sm:$0xff]  }
 0x9ba   :  { %1900 = vmatprep.subr.bf16.mxu0 %v2186_v0 }
 0x9bd   :  { %1901 = vmatpush3.bf16.msra.mxu0 %v2040_v30  ;;  %v2061_v30 = vld [vmem:[%s2714_s11 + $0x10] sm:$0xff]  }
 0x9be   :  { %1902 = vmatprep.subr.bf16.mxu0 %v2186_v0 }
 0x9c1   :  { %1903 = vmatpush3.bf16.msra.mxu0 %v2041_v32  ;;  %v2062_v32 = vld [vmem:[%s2714_s11 + $0x18] sm:$0xff]  }
 0x9c2   :  { %1904 = vmatprep.subr.bf16.mxu0 %v2186_v0 }
 0x9c5   :  { %1905 = vmatpush3.bf16.msra.mxu0 %v2042_v33  ;;  %v2063_v33 = vld [vmem:[%s2714_s11 + $0x20] sm:$0xff]  }
 0x9c6   :  { %1906 = vmatprep.subr.bf16.mxu0 %v2186_v0 }
 0x9c9   :  { %1907 = vmatpush3.bf16.msra.mxu0 %v2043_v34  ;;  %v2064_v34 = vld [vmem:[%s2714_s11 + $0x28] sm:$0xff]  }
 0x9ca   :  { %1908 = vmatprep.subr.bf16.mxu0 %v2186_v0 }
 0xa8b   :  { %v852_v48 = vpop.f32.mrb[8].mxu0 }
 0xa8c   :  { %v853_v49 = vadd.f32 %v1593_v47, %v852_v48  ;;  %v1872_v50 = vpop.f32.mrb[9].mxu0  ;;  %v1625_v48 = vld [vmem:[#allocation5 + $0xc] ss:$0 sm:$0xff] }
 0xa8d   :  { %v855_v51 = vpop.f32.mrb[10].mxu0 }
 0xa8e   :  { %v1873_v52 = vpop.f32.mrb[11].mxu0  ;;  %v858_v31 = vadd.f32 %v853_v49, %v665_v35  ;;  %v2044_v35 = vld [vmem:[%s2711_s8 + $0x68] sm:$0xff]  }
 0xa8f   :  { %1909 = vmatpush3.bf16.msra.mxu0 %v2044_v35  ;;  %v1656_v35 = vld [vmem:[#allocation5 + $0xe] ss:$0 sm:$0xff] }
 0xa90   :  { %v859_v53 = vsel %vm195_vm1, %v858_v31, 0.0  ;;  %1910 = vmatprep.subr.bf16.mxu0 %v2186_v0 }
 0xa91   :  { %860 = vadd.xlane.f32.xlu0 %v859_v53 }
 0xa93   :  { %1911 = vmatpush3.bf16.msra.mxu0 %v2045_v46 }
 0xa94   :  { %1912 = vmatprep.subr.bf16.mxu0 %v2186_v0 }
 0xb1e   :  { %v861_v54 = vpop.xlane.xlu0 %860 }
 0xb1f   :  { %v862_v55 = vmul.f32 0.015625, %v861_v54 }
 0xb21   :  { %v863_v56 = vsub.f32 %v858_v31, %v862_v55  ;;  %v1647_v55 = vld [vmem:[#allocation5 + $0xd] ss:$0 sm:$0xff] }
 0xb23   :  { %v864_v57 = vmul.f32 %v863_v56, %v863_v56 }
 0xb25   :  { %v865_v58 = vsel %vm195_vm1, %v864_v57, 0.0 }
 0xb26   :  { %866 = vadd.xlane.f32.xlu0 %v865_v58 }
 0xb3c   :  { %878 = vrot.lane.b32.xlu0 %v1593_v47, %s2184_s0  ;;  %v2046_v47 = vld [vmem:[%s2711_s8 + $0x78] sm:$0xff]  }
 0xb3d   :  { %1913 = vmatpush3.bf16.msra.mxu0 %v2046_v47 }
 0xb3e   :  { %1950 = vmatprep.subr.bf16.mxu0 %v2186_v0 }
 0xbb3   :  { %v867_v63 = vpop.xlane.xlu0 %866 }
 0xbb4   :  { %v868_v1 = vmul.f32 0.015625, %v867_v63  ;;  %v1986_v63 = vpack.i.bf16 %v2430_v9, %v2428_v8  ;;  %v2050_v8 = vld [vmem:[#allocation7 + $0x18] sm:$0xff]  }
 0xbb6   :  { %v869_v2 = vadd.f32 1e-05, %v868_v1 }
 0xbb7   :  { %v879_v6 = vpop.permute.xlu0 %878 }
 0xbb8   :  { %2079 = vrsqrt.f32 %v869_v2 }
 0xbc2   :  { %v2080_v3 = vpop.eup %2079 }
 0xbc3   :  { %v871_v5 = vmul.f32 %v2080_v3, %v863_v56 }
 0xbc5   :  { %v876_v7 = vmul.f32 %v874_v4, %v871_v5 }
 0xbc7   :  { %v881_v10 = vadd.f32 %v879_v6, %v876_v7  ;;  %v2047_v6 = vld [vmem:[#allocation7] sm:$0xff]   ;;  %v2048_v7 = vld [vmem:[#allocation7 + $0x8] sm:$0xff]  }
 0xbc9   :  { %v882_v11 = vpack.c.bf16 %v881_v10, %v881_v10 }
 0xbcb   :  { %1883 = vmatmul.mubr.msk.bf16.vlgmr.msra.gmra.mrb[12].mxu1 %vm195_vm1, %v882_v11 }
 0xbcc   :  { %1894 = vmatprep.mubr.msk.bf16.mxu1 %vm2187_vm0, %v2186_v0  ;;  %1887 = vmatpush3.bf16.msra.mxu1 %v2035_v25  ;;  %v2056_v25 = vld [vmem:[%s2713_s10 + $0x28] sm:$0xff]  }
 0xbcd   :  { %1888 = vmatprep.subr.bf16.mxu1 %v2186_v0 }
 0xbd0   :  { %1889 = vmatpush3.bf16.msra.mxu1 %v2036_v26  ;;  %v2057_v26 = vld [vmem:[%s2713_s10 + $0x30] sm:$0xff]  }
 0xbd1   :  { %1890 = vmatprep.subr.bf16.mxu1 %v2186_v0 }
 0xbd4   :  { %1891 = vmatpush3.bf16.msra.mxu1 %v2037_v27  ;;  %v2058_v27 = vld [vmem:[%s2713_s10 + $0x38] sm:$0xff]  }
 0xbd5   :  { %1892 = vmatprep.subr.bf16.mxu1 %v2186_v0 }
 0xbd8   :  { %1893 = vmatpush3.bf16.msra.mxu1 %v2038_v28  ;;  %v2059_v28 = vld [vmem:[%s2714_s11] sm:$0xff]  }
 0xbd9   :  { %1918 = vmatprep.subr.bf16.mxu1 %v2186_v0 }
 0xc9e   :  { %v958_v13 = vpop.f32.mrb[12].mxu1 }
 0xc9f   :  { %v959_v14 = vadd.f32 %v1610_v12, %v958_v13  ;;  %v1884_v15 = vpop.f32.mrb[13].mxu1 }
 0xca0   :  { %v961_v16 = vpop.f32.mrb[14].mxu1 }
 0xca1   :  { %v1885_v17 = vpop.f32.mrb[15].mxu1  ;;  %v964_v18 = vadd.f32 %v959_v14, %v881_v10  ;;  %v2049_v10 = vld [vmem:[#allocation7 + $0x10] sm:$0xff]  }
 0xca3   :  { %v966_v19 = vsel %vm195_vm1, %v964_v18, 0.0 }
 0xca4   :  { %967 = vadd.xlane.f32.xlu1 %v966_v19  ;;  %v2051_v19 = vld [vmem:[%s2713_s10] sm:$0xff]  }
 0xcb5   :  { %980 = vrot.lane.b32.xlu1 %v1610_v12, %s2184_s0 }
 0xd31   :  { %v968_v20 = vpop.xlane.xlu1 %967 }
 0xd32   :  { %v969_v21 = vmul.f32 0.015625, %v968_v20 }
 0xd34   :  { %v970_v22 = vsub.f32 %v964_v18, %v969_v21  ;;  %v2052_v21 = vld [vmem:[%s2713_s10 + $0x8] sm:$0xff]  }
 0xd35   :  { %v981_v40 = vpop.permute.xlu1 %980 }
 0xd36   :  { %v971_v23 = vmul.f32 %v970_v22, %v970_v22 }
 0xd38   :  { %v972_v24 = vsel %vm195_vm1, %v971_v23, 0.0  ;;  %v2054_v23 = vld [vmem:[%s2713_s10 + $0x18] sm:$0xff]  }
 0xd39   :  { %973 = vadd.xlane.f32.xlu0 %v972_v24  ;;  %v2055_v24 = vld [vmem:[%s2713_s10 + $0x20] sm:$0xff]  }
 0xdc6   :  { %v974_v36 = vpop.xlane.xlu0 %973 }
 0xdc7   :  { %v975_v37 = vmul.f32 0.015625, %v974_v36 }
 0xdc9   :  { %v976_v38 = vadd.f32 1e-05, %v975_v37 }
 0xdcb   :  { %2081 = vrsqrt.f32 %v976_v38 }
 0xdd5   :  { %v2082_v39 = vpop.eup %2081 }
 0xdd6   :  { %v978_v41 = vmul.f32 %v2082_v39, %v970_v22  ;;  %v2053_v22 = vld [vmem:[%s2713_s10 + $0x10] sm:$0xff]  }
 0xdd8   :  { %v983_v43 = vmul.f32 %v981_v40, %v978_v41 }
 0xdda   :  { %v988_v44 = vadd.f32 %v1616_v42, %v983_v43  ;;  %v2065_v43 = vld [vmem:[%s2714_s11 + $0x30] sm:$0xff]  }
 0xddc   :  { %v989_v45 = vpack.c.bf16 %v988_v44, %v988_v44 }
 0xdde   :  { %1895 = vmatmul.mubr.msk.bf16.vlgmr.msra.gmra.mrb[16].mxu1 %vm195_vm1, %v989_v45  ;;  %v1662_v45 = vld [vmem:[#allocation5 + $0xf] ss:$0 sm:$0xff] }
 0xddf   :  { %1926 = vmatprep.mubr.msk.bf16.mxu1 %vm2187_vm0, %v2186_v0  ;;  %1919 = vmatpush3.bf16.msra.mxu1 %v2047_v6 }
 0xde0   :  { %1920 = vmatprep.subr.bf16.mxu1 %v2186_v0 }
 0xde3   :  { %1921 = vmatpush3.bf16.msra.mxu1 %v2048_v7 }
 0xde4   :  { %1922 = vmatprep.subr.bf16.mxu1 %v2186_v0 }
 0xde7   :  { %1923 = vmatpush3.bf16.msra.mxu1 %v2049_v10 }
 0xde8   :  { %1924 = vmatprep.subr.bf16.mxu1 %v2186_v0 }
 0xdeb   :  { %1925 = vmatpush3.bf16.msra.mxu1 %v2050_v8 }
 0xdec   :  { %1930 = vmatprep.subr.bf16.mxu1 %v2186_v0 }
 0xeb1   :  { %v1065_v49 = vpop.f32.mrb[16].mxu1 }
 0xeb2   :  { %v1066_v50 = vadd.f32 %v1625_v48, %v1065_v49  ;;  %v1896_v51 = vpop.f32.mrb[17].mxu1 }
 0xeb3   :  { %v1068_v52 = vpop.f32.mrb[18].mxu1 }
 0xeb4   :  { %v1071_v31 = vmax.f32 %v1066_v50, 0.0  ;;  %v1897_v53 = vpop.f32.mrb[19].mxu1 }
 0xeb6   :  { %v1072_v54 = vpack.c.bf16 %v1071_v31, %v1071_v31  ;;  %v1671_v31 = vld [vmem:[#allocation5 + $0x10] ss:$0 sm:$0xff] }
 0xeb8   :  { %1915 = vmatmul.mubr.bf16.vlgmr.msra.gmra.mrb[12].mxu0 %v1072_v54 }
 0xeb9   :  { %1966 = vmatprep.mubr.msk.bf16.mxu0 %vm2187_vm0, %v2186_v0  ;;  %1951 = vmatpush3.bf16.msra.mxu0 %v2059_v28 }
 0xeba   :  { %1952 = vmatprep.subr.bf16.mxu0 %v2186_v0 }
 0xebd   :  { %1953 = vmatpush3.bf16.msra.mxu0 %v2060_v29 }
 0xebe   :  { %1954 = vmatprep.subr.bf16.mxu0 %v2186_v0 }
 0xec1   :  { %1955 = vmatpush3.bf16.msra.mxu0 %v2061_v30 }
 0xec2   :  { %1956 = vmatprep.subr.bf16.mxu0 %v2186_v0 }
 0xec5   :  { %1957 = vmatpush3.bf16.msra.mxu0 %v2062_v32 }
 0xec6   :  { %1958 = vmatprep.subr.bf16.mxu0 %v2186_v0 }
 0xec9   :  { %1959 = vmatpush3.bf16.msra.mxu0 %v2063_v33 }
 0xeca   :  { %1960 = vmatprep.subr.bf16.mxu0 %v2186_v0 }
 0xecd   :  { %1961 = vmatpush3.bf16.msra.mxu0 %v2064_v34 }
 0xece   :  { %1962 = vmatprep.subr.bf16.mxu0 %v2186_v0 }
 0xed1   :  { %1963 = vmatpush3.bf16.msra.mxu0 %v2065_v43 }
 0xed2   :  { %1964 = vmatprep.subr.bf16.mxu0 %v2186_v0 }
 0xf8b   :  { %v1177_v56 = vpop.f32.mrb[12].mxu0 }
 0xf8c   :  { %v1178_v57 = vadd.f32 %v1647_v55, %v1177_v56  ;;  %v1916_v58 = vpop.f32.mrb[13].mxu0 }
 0xf8d   :  { %v1180_v59 = vpop.f32.mrb[14].mxu0 }
 0xf8e   :  { %v1917_v60 = vpop.f32.mrb[15].mxu0  ;;  %v1183_v61 = vadd.f32 %v1178_v57, %v988_v44  ;;  %v2066_v44 = vld [vmem:[%s2714_s11 + $0x38] sm:$0xff]   ;;  %s2191_s11 = smov [#allocation8]  }
 0xf8f   :  { %1965 = vmatpush3.bf16.msra.mxu0 %v2066_v44  ;;  %s1539_s1 = sshll.u32 %s2191_s11, 4  ;;  %s1540_s1 = int_to_ptr.vmem [resolvable:$true] %s1539_s1 }
 0xf90   :  { %v1184_v62 = vsel %vm195_vm1, %v1183_v61, 0.0  ;;  %s2151_s24 = scalar_lea.vmem %s1540_s1, 128  ;;  %p2156_p11 = scmp.lt.s32.totalorder %s1540_s1, %s1540_s1 }
 0xf91   :  { %1185 = vadd.xlane.f32.xlu0 %v1184_v62  ;;  %p2152_p10 = scmp.ne.s32.totalorder %s1540_s1, %s2151_s24  ;;  %p2157_p12 = scmp.lt.s32.totalorder %s2151_s24, %s2151_s24 }
 0xf93   :  { %p2158_p13 = por %p2157_p12, %p2156_p11 }
 0xf95   :  { %p2159_p0 = pnand %p2158_p13, %p2152_p10 }
 0xfa7   :  { %1198 = vrot.lane.b32.xlu0 %v1616_v42, %s2184_s0 }
 0xfab   :  { %1203 = vrot.lane.b32.xlu0 %v1647_v55, %s2184_s0 }
 0xfaf   :  { %1987 = vrot.lane.b32.xlu0 %v1986_v63, %s2184_s0 }
0x101e   :  { %v1186_v1 = vpop.xlane.xlu0 %1185 }
0x101f   :  { %v1187_v2 = vmul.f32 0.015625, %v1186_v1 }
0x1021   :  { %v1188_v3 = vsub.f32 %v1183_v61, %v1187_v2 }
0x1022   :  { %v1199_v13 = vpop.permute.xlu0 %1198 }
0x1023   :  { %v1189_v4 = vmul.f32 %v1188_v3, %v1188_v3 }
0x1025   :  { %v1190_v5 = vsel %vm195_vm1, %v1189_v4, 0.0 }
0x1026   :  { %1191 = vadd.xlane.f32.xlu1 %v1190_v5  ;;  %v1204_v17 = vpop.permute.xlu0 %1203 }
0x102a   :  { %v1988_v57 = vpop.permute.xlu0 %1987 }
0x102b   :  { %v1990_v58 = vunpack.i.h.bf16 %v1988_v57  ;;  %v1989_v59 = vunpack.i.l.bf16 %v1988_v57 }
0x10b3   :  { %v1192_v9 = vpop.xlane.xlu1 %1191 }
0x10b4   :  { %v1193_v11 = vmul.f32 0.015625, %v1192_v9 }
0x10b6   :  { %v1194_v12 = vadd.f32 1e-05, %v1193_v11 }
0x10b8   :  { %2083 = vrsqrt.f32 %v1194_v12 }
0x10c2   :  { %v2084_v14 = vpop.eup %2083 }
0x10c3   :  { %v1196_v15 = vmul.f32 %v2084_v14, %v1188_v3 }
0x10c5   :  { %v1201_v16 = vmul.f32 %v1199_v13, %v1196_v15 }
0x10c7   :  { %v2618_v18 = vadd.f32 %v1204_v17, %v1201_v16 }
0x10c9   :  { %v1207_v20 = vpack.c.bf16 %v2618_v18, %v2618_v18  ;;  %v1522_v61 = vsel %vm195_vm1, %v2618_v18, %v1989_v59 }
0x10cb   :  { %1927 = vmatmul.mubr.msk.bf16.vlgmr.msra.gmra.mrb[20].mxu1 %vm195_vm1, %v1207_v20 }
0x10cc   :  { %1931 = vmatpush3.bf16.msra.mxu1 %v2051_v19  ;;  %1946 = vmatprep.mubr.msk.bf16.mxu1 %vm2187_vm0, %v2186_v0 }
0x10cd   :  { %1932 = vmatprep.subr.bf16.mxu1 %v2186_v0 }
0x10d0   :  { %1933 = vmatpush3.bf16.msra.mxu1 %v2052_v21 }
0x10d1   :  { %1934 = vmatprep.subr.bf16.mxu1 %v2186_v0 }
0x10d4   :  { %1935 = vmatpush3.bf16.msra.mxu1 %v2053_v22 }
0x10d5   :  { %1936 = vmatprep.subr.bf16.mxu1 %v2186_v0 }
0x10d8   :  { %1937 = vmatpush3.bf16.msra.mxu1 %v2054_v23 }
0x10d9   :  { %1938 = vmatprep.subr.bf16.mxu1 %v2186_v0 }
0x10dc   :  { %1939 = vmatpush3.bf16.msra.mxu1 %v2055_v24 }
0x10dd   :  { %1940 = vmatprep.subr.bf16.mxu1 %v2186_v0 }
0x10e0   :  { %1941 = vmatpush3.bf16.msra.mxu1 %v2056_v25 }
0x10e1   :  { %1942 = vmatprep.subr.bf16.mxu1 %v2186_v0 }
0x10e4   :  { %1943 = vmatpush3.bf16.msra.mxu1 %v2057_v26 }
0x10e5   :  { %1944 = vmatprep.subr.bf16.mxu1 %v2186_v0 }
0x10e8   :  { %1945 = vmatpush3.bf16.msra.mxu1 %v2058_v27 }
0x119e   :  { %v1282_v36 = vpop.f32.mrb[20].mxu1 }
0x119f   :  { %v1283_v37 = vadd.f32 %v1656_v35, %v1282_v36  ;;  %v1928_v38 = vpop.f32.mrb[21].mxu1 }
0x11a0   :  { %v1285_v39 = vpop.f32.mrb[22].mxu1 }
0x11a1   :  { %v1288_v40 = vmax.f32 %v1283_v37, 0.0  ;;  %v1929_v41 = vpop.f32.mrb[23].mxu1 }
0x11a3   :  { %v1289_v42 = vpack.c.bf16 %v1288_v40, %v1288_v40 }
0x11a5   :  { %1947 = vmatmul.mubr.bf16.vlgmr.msra.gmra.mrb[24].mxu1 %v1289_v42 }
0x1278   :  { %v1393_v46 = vpop.f32.mrb[24].mxu1 }
0x1279   :  { %v1394_v47 = vadd.f32 %v1662_v45, %v1393_v46  ;;  %v1948_v48 = vpop.f32.mrb[25].mxu1 }
0x127a   :  { %v1396_v49 = vpop.f32.mrb[26].mxu1 }
0x127b   :  { %v1399_v50 = vmax.f32 %v1394_v47, 0.0  ;;  %v1949_v51 = vpop.f32.mrb[27].mxu1 }
0x127d   :  { %v1400_v52 = vpack.c.bf16 %v1399_v50, %v1399_v50 }
0x127f   :  { %1967 = vmatmul.mubr.bf16.vlgmr.msra.gmra.mrb[16].mxu0 %v1400_v52 }
0x1352   :  { %v1504_v53 = vpop.f32.mrb[16].mxu0 }
0x1353   :  { %v1505_v54 = vadd.f32 %v1671_v31, %v1504_v53  ;;  %v1968_v55 = vpop.f32.mrb[17].mxu0 }
0x1354   :  { %v1507_v56 = vpop.f32.mrb[18].mxu0 }
0x1355   :  { %1519 = vrot.lane.b32.xlu0 %v1505_v54, %s2184_s0  ;;  %v1969_v0 = vpop.f32.mrb[19].mxu0 }
0x13c7   :  { %v1520_v60 = vpop.permute.xlu0 %1519 }
0x13c8   :  { %v1523_v62 = vsel %vm195_vm1, %v1990_v58, %v1520_v60 }
0x13c9   :  { %v1681_v63 = vpack.c.bf16 %v1523_v62, %v1522_v61 }
0x13cb   :  { %1532 = vst [vmem:[#allocation8] sm:$0xff] %v1681_v63 }
0x13cc   :  { %2162 = shalt.err (!%p2159_p0)
}
0x13cd   :  { %s2163_s26 = scalar_lea.hbm %s2715_s12, 128 }
0x13ce   :  { %p2164_p1 = scmp.ne.s32.totalorder %s2715_s12, %s2163_s26  ;;  %p2167_p2 = scmp.lt.u32.totalorder %s2163_s26, %s2715_s12 }
0x13d0   :  { %p2169_p3 = pnand %p2167_p2, %p2164_p1 }
0x13d2   :  { %2172 = shalt.err (!%p2169_p3)
}
0x13d3   :  { %1542 = dma.vmem_to_hbm [thread:$0]  %s1540_s1, 128, %s2715_s12, [#allocation4]  }
0x13d4   :  { %2177 = dma.done.wait [#allocation4], 128  }
0x13d5   :  { %2178 = vsyncadd [#allocation4], 4294967168 }
0x13d6   :  { %1546 = vsyncpa [#allocation3], 1 }
0x13d7   :  { %1547 = vsyncpa [#allocation6], 1 }
0x13d8   :  { %1548 = vsyncpa [#allocation4], 1 }

</bundles_post_ra>
